<compile_context>
chip_gen: v6e
topology: v6e:2x2x1
jax: 0.10.0
libtpu: 0.0.40
codegen_flags: <defaults>
</compile_context>

<pallas_src>
import functools

import jax
import jax.numpy as jnp
from jax.experimental import pallas as pl
from jax.experimental.pallas import tpu as pltpu

_LANE = 128   # lane width
_TM = 128     # token-tile rows per grid step


def _round_up(x, m):
    return (x + m - 1) // m * m


# ---------------------------------------------------------------------------
# Kernel A: fused Net1 (1x1 conv + ReLU) -> trans (1x1 conv) -> global avg pool
# ---------------------------------------------------------------------------
def _feat_gap_kernel(tok_ref, w1_ref, w2_ref, o_ref, *, inv_hw):
    j = pl.program_id(1)

    @pl.when(j == 0)
    def _():
        o_ref[...] = jnp.zeros_like(o_ref)

    # Net1 stub: 1x1 conv (channel matmul) + ReLU.   bf16 in, f32 acc.
    h = jnp.dot(tok_ref[...], w1_ref[...], preferred_element_type=jnp.float32)
    h = jnp.maximum(h, 0.0).astype(jnp.bfloat16)
    # trans: nn.Conv2d(512, 768, kernel_size=1, bias=False)  (exact semantics)
    y = jnp.dot(h, w2_ref[...], preferred_element_type=jnp.float32)  # (TM, 768)
    # Accumulate the per-image spatial sum directly in the resident output.
    o_ref[...] += jnp.sum(y, axis=0).reshape(o_ref.shape)

    @pl.when(j == pl.num_programs(1) - 1)
    def _():
        o_ref[...] *= inv_hw   # sum -> mean over the *real* (unpadded) HW


def _fused_features_gap(tokens, w1, w2, n, hw_pad, hw, feat_out):
    cpad = tokens.shape[1]
    c_mid = w1.shape[1]
    steps = hw_pad // _TM

    kernel = functools.partial(_feat_gap_kernel, inv_hw=1.0 / hw)
    flops = 2 * n * hw_pad * (cpad * c_mid + c_mid * feat_out)
    bytes_accessed = (tokens.size * 2 + w1.size * 2 + w2.size * 2
                      + n * feat_out * 4)

    return pl.pallas_call(
        kernel,
        out_shape=jax.ShapeDtypeStruct((n, 1, feat_out), jnp.float32),
        grid_spec=pltpu.PrefetchScalarGridSpec(
            num_scalar_prefetch=0,
            grid=(n, steps),                       # reduction (HW) axis last
            in_specs=[
                pl.BlockSpec((_TM, cpad), lambda i, j: (i * steps + j, 0)),
                pl.BlockSpec((cpad, c_mid), lambda i, j: (0, 0)),
                pl.BlockSpec((c_mid, feat_out), lambda i, j: (0, 0)),
            ],
            out_specs=pl.BlockSpec((1, 1, feat_out), lambda i, j: (i, 0, 0)),
        ),
        compiler_params=pltpu.CompilerParams(
            dimension_semantics=("parallel", "arbitrary"),
        ),
        cost_estimate=pl.CostEstimate(
            flops=flops, transcendentals=0, bytes_accessed=bytes_accessed),
    )(tokens, w1, w2)


# ---------------------------------------------------------------------------
# Kernel B: fused Vnet tail (linear + GELU) -> Linear (lane-padded score head)
# ---------------------------------------------------------------------------
def _head_kernel(x_ref, wv_ref, wl_ref, o_ref):
    # Vnet stub tail: linear + GELU.
    h = jnp.dot(x_ref[...].astype(jnp.bfloat16), wv_ref[...],
                preferred_element_type=jnp.float32)
    h = jax.nn.gelu(h).astype(jnp.bfloat16)
    # Linear stub: hidden -> 1, weight lane-padded to 128 (col 0 is real).
    o_ref[...] = jnp.dot(h, wl_ref[...], preferred_element_type=jnp.float32)


def _fused_head(pooled, wv, wl_pad):
    n, feat = pooled.shape
    hidden = wv.shape[1]
    out_w = wl_pad.shape[1]
    return pl.pallas_call(
        _head_kernel,
        out_shape=jax.ShapeDtypeStruct((n, out_w), jnp.float32),
        grid_spec=pltpu.PrefetchScalarGridSpec(
            num_scalar_prefetch=0,
            grid=(1,),
            in_specs=[
                pl.BlockSpec((n, feat), lambda i: (0, 0)),
                pl.BlockSpec((feat, hidden), lambda i: (0, 0)),
                pl.BlockSpec((hidden, out_w), lambda i: (0, 0)),
            ],
            out_specs=pl.BlockSpec((n, out_w), lambda i: (0, 0)),
        ),
        compiler_params=pltpu.CompilerParams(
            dimension_semantics=("arbitrary",),
        ),
        cost_estimate=pl.CostEstimate(
            flops=2 * n * (feat * hidden + hidden * out_w),
            transcendentals=n * hidden,
            bytes_accessed=(pooled.size * 4 + wv.size * 2 + wl_pad.size * 2
                            + n * out_w * 4)),
    )(pooled, wv, wl_pad)


# ---------------------------------------------------------------------------
# Parameter construction (deterministic, in-script).
# ---------------------------------------------------------------------------
def init_params(key, in_ch, feat_ch=512, trans_ch=768, hidden=256):
    k1, k2, k3, k4 = jax.random.split(key, 4)

    def w(k, fan_in, shape):
        return jax.random.normal(k, shape, jnp.float32) / jnp.sqrt(fan_in)

    return {
        # TODO(synk): Net1 is an externally supplied backbone (e.g. ResNet18
        # trunk producing 512-ch feature maps); stand-in = 1x1 conv + ReLU.
        "net1_w": w(k1, in_ch, (in_ch, feat_ch)),        # (C_in, 512)
        # Exact nn.Conv2d(512, 768, 1, 1, bias=False), stored as (512, 768).
        "trans_w": w(k2, feat_ch, (feat_ch, trans_ch)),  # (512, 768)
        # TODO(synk): Vnet is an externally supplied module (ViT-style head);
        # stand-in = global average pool + linear + GELU.
        "vnet_w": w(k3, trans_ch, (trans_ch, hidden)),   # (768, 256)
        # TODO(synk): Linear is an externally supplied scoring head;
        # stand-in = hidden -> 1 projection.
        "linear_w": w(k4, hidden, (hidden, 1)),          # (256, 1)
    }


# ---------------------------------------------------------------------------
# Forward pass (mirrors Net.forward).
# ---------------------------------------------------------------------------
@jax.jit
def net_forward(params, x_nchw):
    N, C, H, W = x_nchw.shape
    HW = H * W
    cpad = _round_up(C, _LANE)     # lane-dense input channels
    hw_pad = _round_up(HW, _TM)    # zero token rows are exact no-ops for GAP

    # NCHW -> (N, HW, C) token layout, zero-pad, flatten, cast to bf16.
    tok = jnp.transpose(x_nchw, (0, 2, 3, 1)).reshape(N, HW, C)
    tok = jnp.pad(tok, ((0, 0), (0, hw_pad - HW), (0, cpad - C)))
    tok = tok.reshape(N * hw_pad, cpad).astype(jnp.bfloat16)

    w1 = jnp.pad(params["net1_w"], ((0, cpad - C), (0, 0))).astype(jnp.bfloat16)
    w2 = params["trans_w"].astype(jnp.bfloat16)
    wv = params["vnet_w"].astype(jnp.bfloat16)
    wl = jnp.pad(params["linear_w"],
                 ((0, 0), (0, _LANE - params["linear_w"].shape[1]))
                 ).astype(jnp.bfloat16)

    feat_out = w2.shape[1]

    # x1 = Net1(x); x1 = trans(x1); (+ Vnet's global-avg-pool) — one kernel.
    pooled = _fused_features_gap(tok, w1, w2, N, hw_pad, HW, feat_out)
    pooled = pooled.reshape(N, feat_out)                       # (N, 768)

    # x1 = Vnet(x1) tail (linear + GELU); out = Linear(x1) — one kernel.
    out_pad = _fused_head(pooled, wv, wl)                      # (N, 128)
    return out_pad[:, :1]                                      # (N, 1)


if __name__ == "__main__":
    key = jax.random.PRNGKey(0)
    k_param, k_x = jax.random.split(key)

    # Small example input: batch=2, channels=4, spatial=16x16.
    x = jax.random.normal(k_x, (2, 4, 16, 16), jnp.float32)
    params = init_params(k_param, in_ch=4)

    out = net_forward(params, x)
    jax.block_until_ready(out)

    assert out.shape == (2, 1) and out.dtype == jnp.float32
    print("KERNEL_OK")
</pallas_src>

<mosaic_0001>
module attributes {stable_mosaic.version = 11 : i64} {
  func.func @_feat_gap_kernel(%arg0: i32, %arg1: i32, %arg2: memref<128x128xbf16, #tpu.memory_space<vmem>>, %arg3: memref<128x512xbf16, #tpu.memory_space<vmem>>, %arg4: memref<512x768xbf16, #tpu.memory_space<vmem>>, %arg5: memref<1x1x768xf32, #tpu.memory_space<vmem>>) attributes {dimension_semantics = [#tpu.dimension_semantics<parallel>, #tpu.dimension_semantics<arbitrary>], iteration_bounds = array<i64: 2, 2>, scalar_prefetch = 0 : i64, scratch_operands = 0 : i64, tpu.core_type = #tpu.core_type<tc>, window_params = [{transform_indices = @transform_0, window_bounds = array<i64: 128, 128>}, {pipeline_mode = #tpu.pipeline_mode<synchronous>, transform_indices = @transform_1, window_bounds = array<i64: 128, 512>}, {pipeline_mode = #tpu.pipeline_mode<synchronous>, transform_indices = @transform_2, window_bounds = array<i64: 512, 768>}, {transform_indices = @transform_3, window_bounds = array<i64: 1, 1, 768>}]} {
    %c0_i32 = arith.constant 0 : i32
    %0 = arith.cmpi eq, %arg1, %c0_i32 : i32
    %1 = arith.extui %0 : i1 to i32
    %c0_i32_0 = arith.constant 0 : i32
    %2 = arith.cmpi ne, %1, %c0_i32_0 : i32
    scf.if %2 {
      %cst_16 = arith.constant 0.000000e+00 : f32
      %19 = vector.broadcast %cst_16 : f32 to vector<1x1x768xf32>
      %c0_17 = arith.constant 0 : index
      %c0_18 = arith.constant 0 : index
      %c0_19 = arith.constant 0 : index
      %20 = vector.load %arg5[%c0_17, %c0_18, %c0_19] : memref<1x1x768xf32, #tpu.memory_space<vmem>>, vector<1x1x768xf32>
      tpu.vector_store %arg5[%c0_17, %c0_18, %c0_19], %19 {strides = array<i32>} : memref<1x1x768xf32, #tpu.memory_space<vmem>>, vector<1x1x768xf32>,
    } else {
    }
    %c0 = arith.constant 0 : index
    %c0_1 = arith.constant 0 : index
    %3 = vector.load %arg2[%c0, %c0_1] : memref<128x128xbf16, #tpu.memory_space<vmem>>, vector<128x128xbf16>
    %c0_2 = arith.constant 0 : index
    %c0_3 = arith.constant 0 : index
    %4 = vector.load %arg3[%c0_2, %c0_3] : memref<128x512xbf16, #tpu.memory_space<vmem>>, vector<128x512xbf16>
    %cst = arith.constant dense<0.000000e+00> : vector<128x512xf32>
    %5 = tpu.matmul %3, %4, %cst {dimension_numbers = #tpu.dot_dimension_numbers<[1], [0], [0], [1], [0, 0, 1, 1], [], []>} : vector<128x128xbf16>, vector<128x512xbf16>, vector<128x512xf32> -> vector<128x512xf32>
    %cst_4 = arith.constant 0.000000e+00 : f32
    %6 = vector.broadcast %cst_4 : f32 to vector<128x512xf32>
    %7 = arith.maximumf %5, %6 : vector<128x512xf32>
    %8 = arith.truncf %7 : vector<128x512xf32> to vector<128x512xbf16>
    %c0_5 = arith.constant 0 : index
    %c0_6 = arith.constant 0 : index
    %9 = vector.load %arg4[%c0_5, %c0_6] : memref<512x768xbf16, #tpu.memory_space<vmem>>, vector<512x768xbf16>
    %cst_7 = arith.constant dense<0.000000e+00> : vector<128x768xf32>
    %10 = tpu.matmul %8, %9, %cst_7 {dimension_numbers = #tpu.dot_dimension_numbers<[1], [0], [0], [1], [0, 0, 1, 1], [], []>} : vector<128x512xbf16>, vector<512x768xbf16>, vector<128x768xf32> -> vector<128x768xf32>
    %c0_8 = arith.constant 0 : index
    %c0_9 = arith.constant 0 : index
    %c0_10 = arith.constant 0 : index
    %11 = vector.load %arg5[%c0_8, %c0_9, %c0_10] : memref<1x1x768xf32, #tpu.memory_space<vmem>>, vector<1x1x768xf32>
    %cst_11 = arith.constant dense<0.000000e+00> : vector<768xf32>
    %12 = vector.multi_reduction <add>, %10, %cst_11 [0] : vector<128x768xf32> to vector<768xf32>
    %13 = vector.shape_cast %12 : vector<768xf32> to vector<1x1x768xf32>
    %14 = arith.addf %11, %13 : vector<1x1x768xf32>
    %c0_12 = arith.constant 0 : index
    %c0_13 = arith.constant 0 : index
    %c0_14 = arith.constant 0 : index
    %15 = vector.load %arg5[%c0_12, %c0_13, %c0_14] : memref<1x1x768xf32, #tpu.memory_space<vmem>>, vector<1x1x768xf32>
    tpu.vector_store %arg5[%c0_12, %c0_13, %c0_14], %14 {strides = array<i32>} : memref<1x1x768xf32, #tpu.memory_space<vmem>>, vector<1x1x768xf32>,
    %c1_i32 = arith.constant 1 : i32
    %16 = arith.cmpi eq, %arg1, %c1_i32 : i32
    %17 = arith.extui %16 : i1 to i32
    %c0_i32_15 = arith.constant 0 : i32
    %18 = arith.cmpi ne, %17, %c0_i32_15 : i32
    scf.if %18 {
      %c0_16 = arith.constant 0 : index
      %c0_17 = arith.constant 0 : index
      %c0_18 = arith.constant 0 : index
      %19 = vector.load %arg5[%c0_16, %c0_17, %c0_18] : memref<1x1x768xf32, #tpu.memory_space<vmem>>, vector<1x1x768xf32>
      %cst_19 = arith.constant 3.906250e-03 : f32
      %20 = vector.broadcast %cst_19 : f32 to vector<1x1x768xf32>
      %21 = arith.mulf %19, %20 : vector<1x1x768xf32>
      %c0_20 = arith.constant 0 : index
      %c0_21 = arith.constant 0 : index
      %c0_22 = arith.constant 0 : index
      %22 = vector.load %arg5[%c0_20, %c0_21, %c0_22] : memref<1x1x768xf32, #tpu.memory_space<vmem>>, vector<1x1x768xf32>
      tpu.vector_store %arg5[%c0_20, %c0_21, %c0_22], %21 {strides = array<i32>} : memref<1x1x768xf32, #tpu.memory_space<vmem>>, vector<1x1x768xf32>,
    } else {
    }
    return
  }
  func.func @transform_0(%arg0: i32, %arg1: i32) -> (i32, i32) {
    %c2_i32 = arith.constant 2 : i32
    %0 = arith.muli %arg0, %c2_i32 : i32
    %1 = arith.addi %0, %arg1 : i32
    %c0_i32 = arith.constant 0 : i32
    %c0_i32_0 = arith.constant 0 : i32
    return %1, %c0_i32 : i32, i32
  }
  func.func @transform_1(%arg0: i32, %arg1: i32) -> (i32, i32) {
    %c0_i32 = arith.constant 0 : i32
    %c0_i32_0 = arith.constant 0 : i32
    %c0_i32_1 = arith.constant 0 : i32
    return %c0_i32, %c0_i32_0 : i32, i32
  }
  func.func @transform_2(%arg0: i32, %arg1: i32) -> (i32, i32) {
    %c0_i32 = arith.constant 0 : i32
    %c0_i32_0 = arith.constant 0 : i32
    %c0_i32_1 = arith.constant 0 : i32
    return %c0_i32, %c0_i32_0 : i32, i32
  }
  func.func @transform_3(%arg0: i32, %arg1: i32) -> (i32, i32, i32) {
    %c0_i32 = arith.constant 0 : i32
    %c0_i32_0 = arith.constant 0 : i32
    %c0_i32_1 = arith.constant 0 : i32
    return %arg0, %c0_i32, %c0_i32_0 : i32, i32, i32
  }
}

module attributes {stable_mosaic.version = 11 : i64} {
  func.func @_head_kernel(%arg0: i32, %arg1: memref<2x768xf32, #tpu.memory_space<vmem>>, %arg2: memref<768x256xbf16, #tpu.memory_space<vmem>>, %arg3: memref<256x128xbf16, #tpu.memory_space<vmem>>, %arg4: memref<2x128xf32, #tpu.memory_space<vmem>>) attributes {dimension_semantics = [#tpu.dimension_semantics<arbitrary>], iteration_bounds = array<i64: 1>, scalar_prefetch = 0 : i64, scratch_operands = 0 : i64, tpu.core_type = #tpu.core_type<tc>, window_params = [{pipeline_mode = #tpu.pipeline_mode<synchronous>, transform_indices = @transform_0, window_bounds = array<i64: 2, 768>}, {pipeline_mode = #tpu.pipeline_mode<synchronous>, transform_indices = @transform_1, window_bounds = array<i64: 768, 256>}, {pipeline_mode = #tpu.pipeline_mode<synchronous>, transform_indices = @transform_2, window_bounds = array<i64: 256, 128>}, {pipeline_mode = #tpu.pipeline_mode<synchronous>, transform_indices = @transform_3, window_bounds = array<i64: 2, 128>}]} {
    %c0 = arith.constant 0 : index
    %c0_0 = arith.constant 0 : index
    %0 = vector.load %arg1[%c0, %c0_0] : memref<2x768xf32, #tpu.memory_space<vmem>>, vector<2x768xf32>
    %1 = arith.truncf %0 : vector<2x768xf32> to vector<2x768xbf16>
    %c0_1 = arith.constant 0 : index
    %c0_2 = arith.constant 0 : index
    %2 = vector.load %arg2[%c0_1, %c0_2] : memref<768x256xbf16, #tpu.memory_space<vmem>>, vector<768x256xbf16>
    %cst = arith.constant dense<0.000000e+00> : vector<2x256xf32>
    %3 = tpu.matmul %1, %2, %cst {dimension_numbers = #tpu.dot_dimension_numbers<[1], [0], [0], [1], [0, 0, 1, 1], [], []>} : vector<2x768xbf16>, vector<768x256xbf16>, vector<2x256xf32> -> vector<2x256xf32>
    %4 = arith.mulf %3, %3 : vector<2x256xf32>
    %5 = arith.mulf %3, %4 : vector<2x256xf32>
    %cst_3 = arith.constant 4.471500e-02 : f32
    %6 = vector.broadcast %cst_3 : f32 to vector<2x256xf32>
    %7 = arith.mulf %6, %5 : vector<2x256xf32>
    %8 = arith.addf %3, %7 : vector<2x256xf32>
    %cst_4 = arith.constant 0.797884583 : f32
    %9 = vector.broadcast %cst_4 : f32 to vector<2x256xf32>
    %10 = arith.mulf %9, %8 : vector<2x256xf32>
    %11 = math.tanh %10 : vector<2x256xf32>
    %cst_5 = arith.constant 1.000000e+00 : f32
    %12 = vector.broadcast %cst_5 : f32 to vector<2x256xf32>
    %13 = arith.addf %12, %11 : vector<2x256xf32>
    %cst_6 = arith.constant 5.000000e-01 : f32
    %14 = vector.broadcast %cst_6 : f32 to vector<2x256xf32>
    %15 = arith.mulf %14, %13 : vector<2x256xf32>
    %16 = arith.mulf %3, %15 : vector<2x256xf32>
    %17 = arith.truncf %16 : vector<2x256xf32> to vector<2x256xbf16>
    %c0_7 = arith.constant 0 : index
    %c0_8 = arith.constant 0 : index
    %18 = vector.load %arg3[%c0_7, %c0_8] : memref<256x128xbf16, #tpu.memory_space<vmem>>, vector<256x128xbf16>
    %cst_9 = arith.constant dense<0.000000e+00> : vector<2x128xf32>
    %19 = tpu.matmul %17, %18, %cst_9 {dimension_numbers = #tpu.dot_dimension_numbers<[1], [0], [0], [1], [0, 0, 1, 1], [], []>} : vector<2x256xbf16>, vector<256x128xbf16>, vector<2x128xf32> -> vector<2x128xf32>
    %c0_10 = arith.constant 0 : index
    %c0_11 = arith.constant 0 : index
    %20 = vector.load %arg4[%c0_10, %c0_11] : memref<2x128xf32, #tpu.memory_space<vmem>>, vector<2x128xf32>
    tpu.vector_store %arg4[%c0_10, %c0_11], %19 {strides = array<i32>} : memref<2x128xf32, #tpu.memory_space<vmem>>, vector<2x128xf32>,
    return
  }
  func.func @transform_0(%arg0: i32) -> (i32, i32) {
    %c0_i32 = arith.constant 0 : i32
    %c0_i32_0 = arith.constant 0 : i32
    %c0_i32_1 = arith.constant 0 : i32
    return %c0_i32, %c0_i32_0 : i32, i32
  }
  func.func @transform_1(%arg0: i32) -> (i32, i32) {
    %c0_i32 = arith.constant 0 : i32
    %c0_i32_0 = arith.constant 0 : i32
    %c0_i32_1 = arith.constant 0 : i32
    return %c0_i32, %c0_i32_0 : i32, i32
  }
  func.func @transform_2(%arg0: i32) -> (i32, i32) {
    %c0_i32 = arith.constant 0 : i32
    %c0_i32_0 = arith.constant 0 : i32
    %c0_i32_1 = arith.constant 0 : i32
    return %c0_i32, %c0_i32_0 : i32, i32
  }
  func.func @transform_3(%arg0: i32) -> (i32, i32) {
    %c0_i32 = arith.constant 0 : i32
    %c0_i32_0 = arith.constant 0 : i32
    %c0_i32_1 = arith.constant 0 : i32
    return %c0_i32, %c0_i32_0 : i32, i32
  }
}

</mosaic_0001>

<bundles_post_ra>
// kernel: net_forward.3
= control target key start
LH: loop header
LB: loop body
LE: loop exit
PB: predicated region body
PF: predicated region fallthrough
CT: control target
= control target key end

     0   :  { %v1249_v36 = vmov 1983009808   ;;  %v23_v38 = vlaneseq  ;;  %s1621_s1 = inlined_call_operand.vmem [shape: bf16[768,256], index: 1, kind: input, shape index: {}]   ;;  %s1622_s0 = inlined_call_operand.vmem [shape: f32[2,768], index: 0, kind: input, shape index: {}]   ;;  %s1623_s2 = inlined_call_operand.vmem [shape: bf16[256,128], index: 2, kind: input, shape index: {}]   ;;  %s1624_s3 = inlined_call_operand.vmem [shape: f32[2,128], index: 3, kind: output, shape index: {}]  }
   0x1   :  { %v1084_v0 = vld [vmem:[%s1621_s1 + $0x74] ss:$8 sps:$4 sm:$0xff]   ;;  %v1088_v2 = vld [vmem:[%s1621_s1 + $0x70] ss:$8 sps:$4 sm:$0xff]   ;;  %v1090_v4 = vld [vmem:[%s1621_s1 + $0x64] ss:$8 sps:$4 sm:$0xff]   ;;  %v21_v37 = vunpack.c.l.s4 %v1249_v36 }
   0x2   :  { %v1086_v1 = vld [vmem:[%s1621_s1 + $0x174] ss:$8 sps:$4 sm:$0xff]   ;;  %632 = vmatprep.subr.bf16.mxu0 %v1084_v0  ;;  %v1089_v3 = vld [vmem:[%s1621_s1 + $0x170] ss:$8 sps:$4 sm:$0xff]   ;;  %v1092_v5 = vld [vmem:[%s1621_s1 + $0x164] ss:$8 sps:$4 sm:$0xff]  }
   0x3   :  { %673 = vmatprep.subr.bf16.mxu1 %v1086_v1  ;;  %633 = vmatpush1.bf16.msra.mxu0 %v1088_v2  ;;  %v1094_v6 = vld [vmem:[%s1621_s1 + $0x60] ss:$8 sps:$4 sm:$0xff]   ;;  %v1096_v8 = vld [vmem:[%s1621_s1 + $0x54] ss:$8 sps:$4 sm:$0xff]   ;;  %v1100_v10 = vld [vmem:[%s1621_s1 + $0x50] ss:$8 sps:$4 sm:$0xff]   ;;  %v22_v42 = vunpack.c.0.s8 %v21_v37 }
   0x4   :  { %674 = vmatpush1.bf16.msra.mxu1 %v1089_v3  ;;  %634 = vmatprep.subr.bf16.mxu0 %v1090_v4  ;;  %v1095_v7 = vld [vmem:[%s1621_s1 + $0x160] ss:$8 sps:$4 sm:$0xff]   ;;  %v1098_v9 = vld [vmem:[%s1621_s1 + $0x154] ss:$8 sps:$4 sm:$0xff]   ;;  %v1101_v11 = vld [vmem:[%s1621_s1 + $0x150] ss:$8 sps:$4 sm:$0xff]  }
   0x5   :  { %675 = vmatprep.subr.bf16.mxu1 %v1092_v5  ;;  %v1102_v12 = vld [vmem:[%s1621_s1 + $0x44] ss:$8 sps:$4 sm:$0xff]   ;;  %v1106_v14 = vld [vmem:[%s1621_s1 + $0x40] ss:$8 sps:$4 sm:$0xff]   ;;  %v1108_v16 = vld [vmem:[%s1621_s1 + $0x34] ss:$8 sps:$4 sm:$0xff]  }
   0x6   :  { %v1104_v13 = vld [vmem:[%s1621_s1 + $0x144] ss:$8 sps:$4 sm:$0xff]   ;;  %v1107_v15 = vld [vmem:[%s1621_s1 + $0x140] ss:$8 sps:$4 sm:$0xff]   ;;  %v1110_v17 = vld [vmem:[%s1621_s1 + $0x134] ss:$8 sps:$4 sm:$0xff]  }
   0x7   :  { %635 = vmatpush1.bf16.msra.mxu0 %v1094_v6  ;;  %v1112_v18 = vld [vmem:[%s1621_s1 + $0x30] ss:$8 sps:$4 sm:$0xff]   ;;  %v1114_v20 = vld [vmem:[%s1621_s1 + $0x24] ss:$8 sps:$4 sm:$0xff]   ;;  %v1118_v22 = vld [vmem:[%s1621_s1 + $0x20] ss:$8 sps:$4 sm:$0xff]  }
   0x8   :  { %676 = vmatpush1.bf16.msra.mxu1 %v1095_v7  ;;  %636 = vmatprep.subr.bf16.mxu0 %v1096_v8  ;;  %v1113_v19 = vld [vmem:[%s1621_s1 + $0x130] ss:$8 sps:$4 sm:$0xff]   ;;  %v1116_v21 = vld [vmem:[%s1621_s1 + $0x124] ss:$8 sps:$4 sm:$0xff]   ;;  %v1119_v23 = vld [vmem:[%s1621_s1 + $0x120] ss:$8 sps:$4 sm:$0xff]  }
   0x9   :  { %677 = vmatprep.subr.bf16.mxu1 %v1098_v9  ;;  %v1120_v24 = vld [vmem:[%s1621_s1 + $0x14] ss:$8 sps:$4 sm:$0xff]   ;;  %v1124_v26 = vld [vmem:[%s1621_s1 + $0x10] ss:$8 sps:$4 sm:$0xff]   ;;  %v1126_v28 = vld [vmem:[%s1621_s1 + $0x4] ss:$8 sps:$4 sm:$0xff]  }
   0xa   :  { %v1122_v25 = vld [vmem:[%s1621_s1 + $0x114] ss:$8 sps:$4 sm:$0xff]   ;;  %v1125_v27 = vld [vmem:[%s1621_s1 + $0x110] ss:$8 sps:$4 sm:$0xff]   ;;  %v1128_v29 = vld [vmem:[%s1621_s1 + $0x104] ss:$8 sps:$4 sm:$0xff]  }
   0xb   :  { %637 = vmatpush1.bf16.msra.mxu0 %v1100_v10  ;;  %v1130_v30 = vld [vmem:[%s1621_s1] ss:$8 sps:$4 sm:$0xff]   ;;  %v1132_v32 = vld [vmem:[%s1621_s1 + $0xf4] ss:$8 sps:$4 sm:$0xff]   ;;  %v1136_v34 = vld [vmem:[%s1621_s1 + $0xf0] ss:$8 sps:$4 sm:$0xff]  }
   0xc   :  { %678 = vmatpush1.bf16.msra.mxu1 %v1101_v11  ;;  %638 = vmatprep.subr.bf16.mxu0 %v1102_v12  ;;  %v1131_v31 = vld [vmem:[%s1621_s1 + $0x100] ss:$8 sps:$4 sm:$0xff]   ;;  %v1134_v33 = vld [vmem:[%s1621_s1 + $0x1f4] ss:$8 sps:$4 sm:$0xff]   ;;  %v1137_v35 = vld [vmem:[%s1621_s1 + $0x1f0] ss:$8 sps:$4 sm:$0xff]  }
   0xd   :  { %679 = vmatprep.subr.bf16.mxu1 %v1104_v13  ;;  %v1138_v39 = vld [vmem:[%s1621_s1 + $0xe4] ss:$8 sps:$4 sm:$0xff]   ;;  %v1142_v41 = vld [vmem:[%s1621_s1 + $0xe0] ss:$8 sps:$4 sm:$0xff]   ;;  %v24_v43 = vshrl.u32 %v23_v38, 7 }
   0xe   :  { %v1140_v40 = vld [vmem:[%s1621_s1 + $0x1e4] ss:$8 sps:$4 sm:$0xff]   ;;  %v1143_v44 = vld [vmem:[%s1621_s1 + $0x1e0] ss:$8 sps:$4 sm:$0xff]   ;;  %v1144_v45 = vld [vmem:[%s1621_s1 + $0xd4] ss:$8 sps:$4 sm:$0xff]  }
   0xf   :  { %639 = vmatpush1.bf16.msra.mxu0 %v1106_v14  ;;  %v1146_v46 = vld [vmem:[%s1621_s1 + $0x1d4] ss:$8 sps:$4 sm:$0xff]   ;;  %v1148_v47 = vld [vmem:[%s1621_s1 + $0xd0] ss:$8 sps:$4 sm:$0xff]   ;;  %v25_v49 = vsub.s32 %v22_v42, %v24_v43  ;;  %v1150_v50 = vld [vmem:[%s1621_s1 + $0xc4] ss:$8 sps:$4 sm:$0xff]  }
  0x10   :  { %680 = vmatpush1.bf16.msra.mxu1 %v1107_v15  ;;  %640 = vmatprep.subr.bf16.mxu0 %v1108_v16  ;;  %v1149_v48 = vld [vmem:[%s1621_s1 + $0x1d0] ss:$8 sps:$4 sm:$0xff]   ;;  %v1152_v51 = vld [vmem:[%s1621_s1 + $0x1c4] ss:$8 sps:$4 sm:$0xff]   ;;  %v1154_v53 = vld [vmem:[%s1621_s1 + $0xc0] ss:$8 sps:$4 sm:$0xff]  }
  0x11   :  { %681 = vmatprep.subr.bf16.mxu1 %v1110_v17  ;;  %v15_v52 = vld [vmem:[%s1622_s0] sm:$0xff]  ;;  %v1156_v57 = vld [vmem:[%s1621_s1 + $0xb4] ss:$8 sps:$4 sm:$0xff]   ;;  %v1160_v61 = vld [vmem:[%s1621_s1 + $0xb0] ss:$8 sps:$4 sm:$0xff]  }
  0x12   :  { %v26_v54 = vrot.slane %v15_v52, %v25_v49  ;;  %v19_v55 = vcombine.high %v15_v52, %v15_v52  ;;  %v1155_v56 = vld [vmem:[%s1621_s1 + $0x1c0] ss:$8 sps:$4 sm:$0xff]   ;;  %v1158_v58 = vld [vmem:[%s1621_s1 + $0x1b4] ss:$8 sps:$4 sm:$0xff]   ;;  %v1161_v0 = vld [vmem:[%s1621_s1 + $0x1b0] ss:$8 sps:$4 sm:$0xff]  }
  0x13   :  { %641 = vmatpush1.bf16.msra.mxu0 %v1112_v18  ;;  %v1162_v1 = vld [vmem:[%s1621_s1 + $0xa4] ss:$8 sps:$4 sm:$0xff]   ;;  %v1166_v4 = vld [vmem:[%s1621_s1 + $0xa0] ss:$8 sps:$4 sm:$0xff]   ;;  %v1168_v6 = vld [vmem:[%s1621_s1 + $0x94] ss:$8 sps:$4 sm:$0xff]  }
  0x14   :  { %682 = vmatpush1.bf16.msra.mxu1 %v1113_v19  ;;  %642 = vmatprep.subr.bf16.mxu0 %v1114_v20  ;;  %v34_v59 = vcombine.high %v26_v54, %v26_v54  ;;  %v33_v60 = vrot.slane %v19_v55, %v25_v49  ;;  %v1164_v2 = vld [vmem:[%s1621_s1 + $0x1a4] ss:$8 sps:$4 sm:$0xff]   ;;  %v1167_v5 = vld [vmem:[%s1621_s1 + $0x1a0] ss:$8 sps:$4 sm:$0xff]   ;;  %v1170_v7 = vld [vmem:[%s1621_s1 + $0x194] ss:$8 sps:$4 sm:$0xff]   ;;  %v50_v15 = vpack.c.bf16 %v26_v54, %v26_v54 }
  0x15   :  { %683 = vmatprep.subr.bf16.mxu1 %v1116_v21  ;;  %v1172_v8 = vld [vmem:[%s1621_s1 + $0x90] ss:$8 sps:$4 sm:$0xff]   ;;  %v1174_v10 = vld [vmem:[%s1621_s1 + $0x84] ss:$8 sps:$4 sm:$0xff]   ;;  %v1178_v12 = vld [vmem:[%s1621_s1 + $0x80] ss:$8 sps:$4 sm:$0xff]  }
  0x16   :  { %v51_v62 = vpack.c.bf16 %v34_v59, %v34_v59  ;;  %v35_v63 = vcombine.high %v33_v60, %v33_v60  ;;  %v1173_v9 = vld [vmem:[%s1621_s1 + $0x190] ss:$8 sps:$4 sm:$0xff]   ;;  %v1176_v11 = vld [vmem:[%s1621_s1 + $0x184] ss:$8 sps:$4 sm:$0xff]   ;;  %v1179_v13 = vld [vmem:[%s1621_s1 + $0x180] ss:$8 sps:$4 sm:$0xff]   ;;  %v52_v16 = vpack.c.bf16 %v33_v60, %v33_v60 }
  0x17   :  { %643 = vmatpush1.bf16.msra.mxu0 %v1118_v22  ;;  %v1183_v14 = vld [vmem:[%s1621_s1 + $0x274] ss:$8 sps:$4 sm:$0xff]   ;;  %v1181_v17 = vld [vmem:[%s1621_s1 + $0x270] ss:$8 sps:$4 sm:$0xff]   ;;  %v1186_v19 = vld [vmem:[%s1621_s1 + $0x264] ss:$8 sps:$4 sm:$0xff]  }
  0x18   :  { %684 = vmatpush1.bf16.msra.mxu1 %v1119_v23  ;;  %644 = vmatprep.subr.bf16.mxu0 %v1120_v24  ;;  %v53_v3 = vpack.c.bf16 %v35_v63, %v35_v63  ;;  %v1474_v18 = vld.sshfl [vmem:[%s1622_s0 + $0x8] sm:$0x33 pattern:$0x76325410]  ;;  %v1189_v23 = vld [vmem:[%s1621_s1 + $0x254] ss:$8 sps:$4 sm:$0xff]  }
  0x19   :  { %685 = vmatprep.subr.bf16.mxu1 %v1122_v25  ;;  %664 = vmatprep.mubr.bf16.mxu0 %v51_v62  ;;  %v43_v20 = vcombine.high %v1474_v18, %v1474_v18  ;;  %v1184_v22 = vld [vmem:[%s1621_s1 + $0x260] ss:$8 sps:$4 sm:$0xff]   ;;  %v1187_v24 = vld [vmem:[%s1621_s1 + $0x250] ss:$8 sps:$4 sm:$0xff]   ;;  %v1192_v25 = vld [vmem:[%s1621_s1 + $0x244] ss:$8 sps:$4 sm:$0xff]  }
  0x1a   :  { %705 = vmatprep.mubr.bf16.mxu1 %v53_v3  ;;  %v1205_v36 = vld [vmem:[%s1621_s1 + $0x2f0] ss:$8 sps:$4 sm:$0xff]   ;;  %v1210_v37 = vld [vmem:[%s1621_s1 + $0x2e4] ss:$8 sps:$4 sm:$0xff]   ;;  %v1208_v38 = vld [vmem:[%s1621_s1 + $0x2e0] ss:$8 sps:$4 sm:$0xff]  }
  0x1b   :  { %645 = vmatpush1.bf16.msra.mxu0 %v1124_v26  ;;  %v55_v21 = vpack.c.bf16 %v43_v20, %v43_v20  ;;  %v1190_v26 = vld [vmem:[%s1621_s1 + $0x240] ss:$8 sps:$4 sm:$0xff]   ;;  %v1219_v43 = vld [vmem:[%s1621_s1 + $0x2b4] ss:$8 sps:$4 sm:$0xff]   ;;  %v1228_v49 = vld [vmem:[%s1621_s1 + $0x284] ss:$8 sps:$4 sm:$0xff]  }
  0x1c   :  { %686 = vmatpush1.bf16.msra.mxu1 %v1125_v27  ;;  %646 = vmatprep.subr.bf16.mxu0 %v1126_v28  ;;  %v1195_v27 = vld [vmem:[%s1621_s1 + $0x234] ss:$8 sps:$4 sm:$0xff]   ;;  %v1193_v28 = vld [vmem:[%s1621_s1 + $0x230] ss:$8 sps:$4 sm:$0xff]   ;;  %v1214_v42 = vld [vmem:[%s1621_s1 + $0x2c0] ss:$8 sps:$4 sm:$0xff]  }
  0x1d   :  { %687 = vmatprep.subr.bf16.mxu1 %v1128_v29  ;;  %v1198_v29 = vld [vmem:[%s1621_s1 + $0x224] ss:$8 sps:$4 sm:$0xff]   ;;  %v1229_v52 = vld [vmem:[%s1623_s2 + $0x78] sm:$0xff]   ;;  %v1231_v54 = vld [vmem:[%s1623_s2 + $0x70] sm:$0xff]  }
  0x1e   :  { %v1232_v55 = vld [vmem:[%s1623_s2 + $0x30] sm:$0xff]   ;;  %v1236_v59 = vld [vmem:[%s1623_s2 + $0x20] sm:$0xff]   ;;  %v1237_v60 = vld [vmem:[%s1623_s2 + $0x58] sm:$0xff]  }
  0x1f   :  { %647 = vmatpush1.bf16.msra.mxu0 %v1130_v30  ;;  %v1196_v30 = vld [vmem:[%s1621_s1 + $0x220] ss:$8 sps:$4 sm:$0xff]   ;;  %v1239_v62 = vld [vmem:[%s1623_s2 + $0x50] sm:$0xff]  }
  0x20   :  { %688 = vmatpush1.bf16.msra.mxu1 %v1131_v31  ;;  %648 = vmatprep.subr.bf16.mxu0 %v1132_v32  ;;  %v1201_v31 = vld [vmem:[%s1621_s1 + $0x214] ss:$8 sps:$4 sm:$0xff]   ;;  %v1199_v32 = vld [vmem:[%s1621_s1 + $0x210] ss:$8 sps:$4 sm:$0xff]   ;;  %v1244_v3 = vld [vmem:[%s1623_s2] sm:$0xff]  }
  0x21   :  { %689 = vmatprep.subr.bf16.mxu1 %v1134_v33  ;;  %v1204_v33 = vld [vmem:[%s1621_s1 + $0x204] ss:$8 sps:$4 sm:$0xff]   ;;  %v1240_v63 = vld [vmem:[%s1623_s2 + $0x10] sm:$0xff]  }
  0x23   :  { %649 = vmatpush2.bf16.msra.mxu0 %v1136_v34  ;;  %v1202_v34 = vld [vmem:[%s1621_s1 + $0x200] ss:$8 sps:$4 sm:$0xff]  }
  0x24   :  { %690 = vmatpush2.bf16.msra.mxu1 %v1137_v35  ;;  %650 = vmatprep.subr.bf16.mxu0 %v1138_v39  ;;  %v1207_v35 = vld [vmem:[%s1621_s1 + $0x2f4] ss:$8 sps:$4 sm:$0xff]  }
  0x25   :  { %691 = vmatprep.subr.bf16.mxu1 %v1140_v40  ;;  %v1213_v39 = vld [vmem:[%s1621_s1 + $0x2d4] ss:$8 sps:$4 sm:$0xff]   ;;  %v1211_v40 = vld [vmem:[%s1621_s1 + $0x2d0] ss:$8 sps:$4 sm:$0xff]  }
  0x27   :  { %651 = vmatpush2.bf16.msra.mxu0 %v1142_v41  ;;  %v1216_v41 = vld [vmem:[%s1621_s1 + $0x2c4] ss:$8 sps:$4 sm:$0xff]  }
  0x28   :  { %692 = vmatpush2.bf16.msra.mxu1 %v1143_v44  ;;  %652 = vmatprep.subr.bf16.mxu0 %v1144_v45  ;;  %v1217_v44 = vld [vmem:[%s1621_s1 + $0x2b0] ss:$8 sps:$4 sm:$0xff]   ;;  %v1222_v45 = vld [vmem:[%s1621_s1 + $0x2a4] ss:$8 sps:$4 sm:$0xff]  }
  0x29   :  { %693 = vmatprep.subr.bf16.mxu1 %v1146_v46  ;;  %v1220_v46 = vld [vmem:[%s1621_s1 + $0x2a0] ss:$8 sps:$4 sm:$0xff]  }
  0x2b   :  { %653 = vmatpush2.bf16.msra.mxu0 %v1148_v47  ;;  %v1225_v47 = vld [vmem:[%s1621_s1 + $0x294] ss:$8 sps:$4 sm:$0xff]  }
  0x2c   :  { %694 = vmatpush2.bf16.msra.mxu1 %v1149_v48  ;;  %654 = vmatprep.subr.bf16.mxu0 %v1150_v50  ;;  %v1223_v48 = vld [vmem:[%s1621_s1 + $0x290] ss:$8 sps:$4 sm:$0xff]   ;;  %v1226_v50 = vld [vmem:[%s1621_s1 + $0x280] ss:$8 sps:$4 sm:$0xff]  }
  0x2d   :  { %695 = vmatprep.subr.bf16.mxu1 %v1152_v51  ;;  %v54_v51 = vpack.c.bf16 %v1474_v18, %v1474_v18 }
  0x2f   :  { %655 = vmatpush2.bf16.msra.mxu0 %v1154_v53  ;;  %v1230_v53 = vld [vmem:[%s1623_s2 + $0x38] sm:$0xff]  }
  0x30   :  { %696 = vmatpush2.bf16.msra.mxu1 %v1155_v56  ;;  %656 = vmatprep.subr.bf16.mxu0 %v1156_v57  ;;  %v1233_v56 = vld [vmem:[%s1623_s2 + $0x68] sm:$0xff]  }
  0x31   :  { %697 = vmatprep.subr.bf16.mxu1 %v1158_v58  ;;  %v1234_v57 = vld [vmem:[%s1623_s2 + $0x28] sm:$0xff]   ;;  %v1235_v58 = vld [vmem:[%s1623_s2 + $0x60] sm:$0xff]  }
  0x33   :  { %657 = vmatpush2.bf16.msra.mxu0 %v1160_v61  ;;  %v1238_v61 = vld [vmem:[%s1623_s2 + $0x18] sm:$0xff]  }
  0x34   :  { %698 = vmatpush2.bf16.msra.mxu1 %v1161_v0  ;;  %658 = vmatprep.subr.bf16.mxu0 %v1162_v1  ;;  %v1241_v0 = vld [vmem:[%s1623_s2 + $0x48] sm:$0xff]  }
  0x35   :  { %699 = vmatprep.subr.bf16.mxu1 %v1164_v2  ;;  %v1242_v1 = vld [vmem:[%s1623_s2 + $0x8] sm:$0xff]   ;;  %v1243_v2 = vld [vmem:[%s1623_s2 + $0x40] sm:$0xff]  }
  0x37   :  { %659 = vmatpush2.bf16.msra.mxu0 %v1166_v4 }
  0x38   :  { %700 = vmatpush2.bf16.msra.mxu1 %v1167_v5  ;;  %660 = vmatprep.subr.bf16.mxu0 %v1168_v6 }
  0x39   :  { %701 = vmatprep.subr.bf16.mxu1 %v1170_v7 }
  0x3b   :  { %661 = vmatpush2.bf16.msra.mxu0 %v1172_v8 }
  0x3c   :  { %702 = vmatpush2.bf16.msra.mxu1 %v1173_v9  ;;  %662 = vmatprep.subr.bf16.mxu0 %v1174_v10 }
  0x3d   :  { %703 = vmatprep.subr.bf16.mxu1 %v1176_v11 }
  0x3f   :  { %663 = vmatpush2.bf16.msra.mxu0 %v1178_v12 }
  0x40   :  { %704 = vmatpush2.bf16.msra.mxu1 %v1179_v13  ;;  %714 = vmatprep.subr.bf16.mxu0 %v1183_v14 }
  0x41   :  { %1061 = vmatprep.subr.bf16.mxu1 %v1229_v52 }
  0x42   :  { %665 = vmatmul.mubr.bf16.vlgmr.msra.gmra.mxu0 %v50_v15 }
  0x43   :  { %706 = vmatmul.mubr.bf16.vlgmr.msra.gmra.mxu1 %v52_v16  ;;  %715 = vmatpush1.bf16.msra.mxu0 %v1181_v17 }
  0x44   :  { %716 = vmatprep.subr.bf16.mxu0 %v1186_v19  ;;  %746 = vmatprep.mubr.bf16.mxu0 %v55_v21 }
  0x45   :  { %1062 = vmatpush3.bf16.msra.mxu1 %v1230_v53 }
  0x46   :  { %1063 = vmatprep.subr.bf16.mxu1 %v1231_v54 }
  0x47   :  { %717 = vmatpush1.bf16.msra.mxu0 %v1184_v22 }
  0x48   :  { %718 = vmatprep.subr.bf16.mxu0 %v1189_v23 }
  0x49   :  { %1064 = vmatpush3.bf16.msra.mxu1 %v1232_v55 }
  0x4a   :  { %1065 = vmatprep.subr.bf16.mxu1 %v1233_v56 }
  0x4b   :  { %719 = vmatpush1.bf16.msra.mxu0 %v1187_v24 }
  0x4c   :  { %720 = vmatprep.subr.bf16.mxu0 %v1192_v25 }
  0x4d   :  { %1066 = vmatpush3.bf16.msra.mxu1 %v1234_v57 }
  0x4e   :  { %1067 = vmatprep.subr.bf16.mxu1 %v1235_v58 }
  0x4f   :  { %721 = vmatpush1.bf16.msra.mxu0 %v1190_v26 }
  0x50   :  { %722 = vmatprep.subr.bf16.mxu0 %v1195_v27 }
  0x51   :  { %1068 = vmatpush3.bf16.msra.mxu1 %v1236_v59 }
  0x52   :  { %1069 = vmatprep.subr.bf16.mxu1 %v1237_v60 }
  0x53   :  { %723 = vmatpush1.bf16.msra.mxu0 %v1193_v28 }
  0x54   :  { %724 = vmatprep.subr.bf16.mxu0 %v1198_v29 }
  0x55   :  { %1070 = vmatpush3.bf16.msra.mxu1 %v1238_v61 }
  0x56   :  { %1071 = vmatprep.subr.bf16.mxu1 %v1239_v62 }
  0x57   :  { %725 = vmatpush1.bf16.msra.mxu0 %v1196_v30 }
  0x58   :  { %726 = vmatprep.subr.bf16.mxu0 %v1201_v31 }
  0x59   :  { %1072 = vmatpush3.bf16.msra.mxu1 %v1240_v63 }
  0x5a   :  { %1073 = vmatprep.subr.bf16.mxu1 %v1241_v0 }
  0x5b   :  { %727 = vmatpush1.bf16.msra.mxu0 %v1199_v32 }
  0x5c   :  { %728 = vmatprep.subr.bf16.mxu0 %v1204_v33 }
  0x5d   :  { %1074 = vmatpush3.bf16.msra.mxu1 %v1242_v1 }
  0x5e   :  { %1075 = vmatprep.subr.bf16.mxu1 %v1243_v2 }
  0x5f   :  { %729 = vmatpush1.bf16.msra.mxu0 %v1202_v34 }
  0x60   :  { %730 = vmatprep.subr.bf16.mxu0 %v1207_v35 }
  0x61   :  { %1076 = vmatpush3.bf16.msra.mxu1 %v1244_v3 }
  0x63   :  { %731 = vmatpush2.bf16.msra.mxu0 %v1205_v36 }
  0x64   :  { %732 = vmatprep.subr.bf16.mxu0 %v1210_v37 }
  0x67   :  { %733 = vmatpush2.bf16.msra.mxu0 %v1208_v38 }
  0x68   :  { %734 = vmatprep.subr.bf16.mxu0 %v1213_v39 }
  0x6b   :  { %735 = vmatpush2.bf16.msra.mxu0 %v1211_v40 }
  0x6c   :  { %736 = vmatprep.subr.bf16.mxu0 %v1216_v41 }
  0x6f   :  { %737 = vmatpush2.bf16.msra.mxu0 %v1214_v42 }
  0x70   :  { %738 = vmatprep.subr.bf16.mxu0 %v1219_v43 }
  0x73   :  { %739 = vmatpush2.bf16.msra.mxu0 %v1217_v44 }
  0x74   :  { %740 = vmatprep.subr.bf16.mxu0 %v1222_v45 }
  0x77   :  { %741 = vmatpush2.bf16.msra.mxu0 %v1220_v46 }
  0x78   :  { %742 = vmatprep.subr.bf16.mxu0 %v1225_v47 }
  0x7b   :  { %743 = vmatpush2.bf16.msra.mxu0 %v1223_v48 }
  0x7c   :  { %744 = vmatprep.subr.bf16.mxu0 %v1228_v49 }
  0x7f   :  { %745 = vmatpush2.bf16.msra.mxu0 %v1226_v50 }
  0x82   :  { %747 = vmatmul.mubr.bf16.vlgmr.msra.gmra.mxu0 %v54_v51 }
 0x102   :  { %v666_v4 = vpop.f32.mrf.mxu0 }
 0x103   :  { %v707_v5 = vpop.f32.mrf.mxu1 }
 0x104   :  { %v708_v6 = vadd.f32 %v707_v5, %v666_v4  ;;  %v668_v7 = vpop.f32.mrf.mxu0 }
 0x105   :  { %v709_v8 = vpop.f32.mrf.mxu1 }
 0x106   :  { %v670_v9 = vpop.f32.mrf.mxu0  ;;  %v710_v14 = vadd.f32 %v709_v8, %v668_v7 }
 0x107   :  { %v711_v10 = vpop.f32.mrf.mxu1 }
 0x108   :  { %v671_v11 = vpop.f32.mrf.mxu0 }
 0x109   :  { %v712_v12 = vpop.f32.mrf.mxu1 }
 0x142   :  { %v748_v13 = vpop.f32.mrf.mxu0 }
 0x143   :  { %v749_v15 = vadd.f32 %v748_v13, %v708_v6 }
 0x144   :  { %v750_v16 = vpop.f32.mrf.mxu0 }
 0x145   :  { %v755_v17 = vmul.f32 %v749_v15, %v749_v15  ;;  %v751_v18 = vadd.f32 %v750_v16, %v710_v14 }
 0x146   :  { %v752_v19 = vpop.f32.mrf.mxu0 }
 0x147   :  { %v757_v20 = vmul.f32 %v755_v17, %v749_v15  ;;  %v756_v21 = vmul.f32 %v751_v18, %v751_v18 }
 0x148   :  { %v753_v22 = vpop.f32.mrf.mxu0 }
 0x149   :  { %v759_v23 = vmul.f32 0.044715, %v757_v20  ;;  %v758_v24 = vmul.f32 %v756_v21, %v751_v18 }
 0x14b   :  { %v761_v25 = vadd.f32 %v759_v23, %v749_v15  ;;  %v760_v26 = vmul.f32 0.044715, %v758_v24 }
 0x14d   :  { %v763_v27 = vmul.f32 0.7978846, %v761_v25  ;;  %v762_v28 = vadd.f32 %v760_v26, %v751_v18 }
 0x14f   :  { %1245 = vtanh.f32 %v763_v27  ;;  %v764_v29 = vmul.f32 0.7978846, %v762_v28 }
 0x151   :  { %1247 = vtanh.f32 %v764_v29 }
 0x15c   :  { %v1246_v30 = vpop.eup %1245 }
 0x15d   :  { %v767_v31 = vadd.f32 1.0, %v1246_v30 }
 0x15e   :  { %v1248_v32 = vpop.eup %1247 }
 0x15f   :  { %v768_v33 = vadd.f32 1.0, %v1248_v32  ;;  %v769_v34 = vmul.f32 0.5, %v767_v31 }
 0x161   :  { %v770_v35 = vmul.f32 0.5, %v768_v33  ;;  %v771_v36 = vmul.f32 %v769_v34, %v749_v15 }
 0x163   :  { %v772_v37 = vmul.f32 %v770_v35, %v751_v18  ;;  %v773_v39 = vpack.c.bf16 %v771_v36, %v771_v36 }
 0x165   :  { %v774_v38 = vpack.c.bf16 %v772_v37, %v772_v37 }
 0x167   :  { %935 = vmatprep.mubr.bf16.mxu1 %v774_v38 }
 0x168   :  { %936 = vmatmul.mubr.bf16.vlgmr.msra.gmra.mxu1 %v773_v39 }
 0x228   :  { %v1077_v40 = vpop.f32.mrf.mxu1 }
 0x22a   :  { %v1078_v41 = vpop.f32.mrf.mxu1 }
 0x22b   :  { %v1079_v42 = vadd.f32 %v1078_v41, %v1077_v40 }
 0x22c   :  { %v1080_v43 = vpop.f32.mrf.mxu1 }
 0x22d   :  { %943 = vst [vmem:[%s1624_s3] sm:$0x3] %v1079_v42 }
 0x22e   :  { %v1081_v44 = vpop.f32.mrf.mxu1 }

// kernel: net_forward.2
= control target key start
LH: loop header
LB: loop body
LE: loop exit
PB: predicated region body
PF: predicated region fallthrough
CT: control target
= control target key end

     0   :  { %s3563_s12 = smov 0   ;;  %s3565_s13 = smov 0   ;;  %s4511_s0 = inlined_call_operand.vmem [shape: bf16[512,128], index: 0, kind: input, shape index: {}]   ;;  %s4512_s1 = inlined_call_operand.vmem [shape: bf16[128,512], index: 1, kind: input, shape index: {}]   ;;  %s4513_s2 = inlined_call_operand.vmem [shape: bf16[512,768], index: 2, kind: input, shape index: {}]   ;;  %s4514_s3 = inlined_call_operand.vmem [shape: f32[2,1,768], index: 3, kind: output, shape index: {}]  }
   0x1   :  { %s3567_s14 = smov 0   ;;  %s3569_s15 = smov 0  }
   0x2   :  { %s3571_s16 = smov 0  }
   0x3 LB: > { %s22_s17 = sadd.s32 1, %s3530_s14  ;;  %s25_s18 = sadd.s32 1, %s3534_s15  ;;  %s3538_s16 = sphi %s3571_s16, %s13_s16   ;;  %s3534_s15 = sphi %s3569_s15, %s4518_s15   ;;  %s3530_s14 = sphi %s3567_s14, %s4517_s14   ;;  %s3526_s13 = sphi %s3565_s13, %s4516_s13   ;;  %s3522_s12 = sphi %s3563_s12, %s4515_s12  }
   0x4   : > { %p23_p0 = scmp.ge.s32.totalorder %s22_s17, 2  ;;  %p2872_p1 = scmp.ge.s32.totalorder %s3538_s16, 1 }
   0x5   : > { %p158_p2 = scmp.lt.s32.totalorder %s3538_s16, 5 }
   0x6   : > { %s4520_s17 = smov (%p23_p0, %s22_s17), 0  ;;  %s4522_s18 = smov (!%p23_p0, %s25_s18), %s3534_s15 }
   0x7   : > { %p159_p3 = pnand %p2872_p1, %p158_p2  ;;  %p27_p4 = scmp.ge.s32.totalorder %s4522_s18, 2 }
   0x8   : > { %s2873_s19 = sshll.u32 (!%p159_p3), %s3526_s13, 1  ;;  %p193_p5 = scmp.lt.s32.totalorder (!%p159_p3), %s3526_s13, 1 }
   0x9   : > { %s4524_s18 = smov (%p27_p4, %s4522_s18), 0  ;;  %162 = sbr.rel (%p159_p3) target bundleno = 683 (0x2ab), region = 32 }
   0xa   : > { %s184_s20 = sadd.s32 (!%p159_p3), %s3522_s12, %s2873_s19  ;;  %p2876_p7 = scmp.ne.s32.totalorder (!%p159_p3), %s3522_s12, 0 }
   0xb   : > { %s2874_s21 = sshll.u32 (!%p159_p3), %s184_s20, 4 }
   0xc   : > { %p186_p6 = scmp.lt.s32.totalorder (!%p159_p3), %s2874_s21, 63 }
   0xe   : > { %s4526_s13 = smov (!%p193_p5, %s3526_s13), 1  ;;  %s4528_s21 = smov (!%p186_p6, %s2874_s21), 63 }
   0xf   : > { %s3112_s22 = smul.u32 6, %s4526_s13  ;;  %s2875_s23 = sshll.u32 %s4528_s21, 2 }
  0x10   : > { %s3599_s26 = scalar_lea.vmem %s4511_s0, %s2875_s23  ;;  %201 = sbr.rel (%p2876_p7) target bundleno = 25 (0x19), region = 36 }
  0x11   : > { %s3604_s29 = scalar_lea.vmem %s4514_s3, %s3112_s22 }
  0x15   : > { %v202_v0 = vlaneseq  ;;  %v3540_v1 = vmov 0.0  }
  0x17   : > { %vm204_vm0 = vcmp.lt.s32.totalorder %v202_v0, 768 }
  0x18   : > { %206 = vst.msk [vmem:[%s3604_s29] sm:$0x3f] %vm204_vm0, %v3540_v1 }
  0x19 PF: > { %v3156_v2 = vld [vmem:[%s4512_s1 + $0xe4] ss:$16 sps:$4 sm:$0xff]   ;;  %v3158_v3 = vld [vmem:[%s4512_s1 + $0xec] ss:$16 sps:$4 sm:$0xff]   ;;  %v3541_v4 = vmov 0   ;;  %p3109_p8 = scmp.ne.s32.totalorder %s3522_s12, 1 }
  0x1a   : > { %495 = vmatprep.mubr.bf16.mxu0 %v3541_v4  ;;  %608 = vmatprep.mubr.bf16.mxu1 %v3541_v4  ;;  %v3160_v5 = vld [vmem:[%s4512_s1 + $0xe0] ss:$16 sps:$4 sm:$0xff]   ;;  %v3161_v6 = vld [vmem:[%s4512_s1 + $0xe8] ss:$16 sps:$4 sm:$0xff]   ;;  %v3162_v7 = vld [vmem:[%s4512_s1 + $0xc4] ss:$16 sps:$4 sm:$0xff]  }
  0x1b   : > { %463 = vmatprep.subr.bf16.mxu0 %v3156_v2  ;;  %576 = vmatprep.subr.bf16.mxu1 %v3158_v3  ;;  %v3164_v8 = vld [vmem:[%s4512_s1 + $0xcc] ss:$16 sps:$4 sm:$0xff]   ;;  %v3166_v9 = vld [vmem:[%s4512_s1 + $0xc0] ss:$16 sps:$4 sm:$0xff]   ;;  %v3167_v10 = vld [vmem:[%s4512_s1 + $0xc8] ss:$16 sps:$4 sm:$0xff]  }
  0x1c   : > { %464 = vmatpush1.bf16.msra.mxu0 %v3160_v5  ;;  %577 = vmatpush1.bf16.msra.mxu1 %v3161_v6  ;;  %v3168_v11 = vld [vmem:[%s4512_s1 + $0xa4] ss:$16 sps:$4 sm:$0xff]   ;;  %v3170_v12 = vld [vmem:[%s4512_s1 + $0xac] ss:$16 sps:$4 sm:$0xff]   ;;  %v3172_v13 = vld [vmem:[%s4512_s1 + $0xa0] ss:$16 sps:$4 sm:$0xff]  }
  0x1d   : > { %465 = vmatprep.subr.bf16.mxu0 %v3162_v7  ;;  %578 = vmatprep.subr.bf16.mxu1 %v3164_v8  ;;  %v3173_v14 = vld [vmem:[%s4512_s1 + $0xa8] ss:$16 sps:$4 sm:$0xff]   ;;  %v3174_v15 = vld [vmem:[%s4512_s1 + $0x84] ss:$16 sps:$4 sm:$0xff]   ;;  %v3176_v16 = vld [vmem:[%s4512_s1 + $0x8c] ss:$16 sps:$4 sm:$0xff]  }
  0x1e   : > { %v3178_v17 = vld [vmem:[%s4512_s1 + $0x80] ss:$16 sps:$4 sm:$0xff]   ;;  %v3179_v18 = vld [vmem:[%s4512_s1 + $0x88] ss:$16 sps:$4 sm:$0xff]   ;;  %v3180_v19 = vld [vmem:[%s4512_s1 + $0x64] ss:$16 sps:$4 sm:$0xff]  }
  0x1f   : > { %v3182_v20 = vld [vmem:[%s4512_s1 + $0x6c] ss:$16 sps:$4 sm:$0xff]   ;;  %v3184_v21 = vld [vmem:[%s4512_s1 + $0x60] ss:$16 sps:$4 sm:$0xff]   ;;  %v3185_v22 = vld [vmem:[%s4512_s1 + $0x68] ss:$16 sps:$4 sm:$0xff]  }
  0x20   : > { %466 = vmatpush1.bf16.msra.mxu0 %v3166_v9  ;;  %579 = vmatpush1.bf16.msra.mxu1 %v3167_v10  ;;  %v3186_v23 = vld [vmem:[%s4512_s1 + $0x44] ss:$16 sps:$4 sm:$0xff]   ;;  %v3188_v24 = vld [vmem:[%s4512_s1 + $0x4c] ss:$16 sps:$4 sm:$0xff]   ;;  %v3190_v25 = vld [vmem:[%s4512_s1 + $0x40] ss:$16 sps:$4 sm:$0xff]  }
  0x21   : > { %467 = vmatprep.subr.bf16.mxu0 %v3168_v11  ;;  %580 = vmatprep.subr.bf16.mxu1 %v3170_v12  ;;  %v3191_v26 = vld [vmem:[%s4512_s1 + $0x48] ss:$16 sps:$4 sm:$0xff]   ;;  %v3192_v27 = vld [vmem:[%s4512_s1 + $0x24] ss:$16 sps:$4 sm:$0xff]   ;;  %v3194_v28 = vld [vmem:[%s4512_s1 + $0x2c] ss:$16 sps:$4 sm:$0xff]  }
  0x22   : > { %v3196_v29 = vld [vmem:[%s4512_s1 + $0x20] ss:$16 sps:$4 sm:$0xff]   ;;  %v3197_v30 = vld [vmem:[%s4512_s1 + $0x28] ss:$16 sps:$4 sm:$0xff]   ;;  %v3198_v31 = vld [vmem:[%s4512_s1 + $0x4] ss:$16 sps:$4 sm:$0xff]  }
  0x23   : > { %v3200_v32 = vld [vmem:[%s4512_s1 + $0xc] ss:$16 sps:$4 sm:$0xff]   ;;  %v3202_v33 = vld [vmem:[%s4512_s1] ss:$16 sps:$4 sm:$0xff]   ;;  %v3203_v34 = vld [vmem:[%s4512_s1 + $0x8] ss:$16 sps:$4 sm:$0xff]  }
  0x24   : > { %468 = vmatpush1.bf16.msra.mxu0 %v3172_v13  ;;  %581 = vmatpush1.bf16.msra.mxu1 %v3173_v14  ;;  %v3214_v35 = vld [vmem:[%s4513_s2 + $0x154] ss:$24 sps:$4 sm:$0xff]   ;;  %v3204_v36 = vld [vmem:[%s3599_s26] sm:$0xff]   ;;  %v3212_v38 = vld [vmem:[%s4513_s2 + $0x150] ss:$24 sps:$4 sm:$0xff]  }
  0x25   : > { %469 = vmatprep.subr.bf16.mxu0 %v3174_v15  ;;  %582 = vmatprep.subr.bf16.mxu1 %v3176_v16  ;;  %v3217_v37 = vld [vmem:[%s4513_s2 + $0x454] ss:$24 sps:$4 sm:$0xff]   ;;  %v3215_v39 = vld [vmem:[%s4513_s2 + $0x450] ss:$24 sps:$4 sm:$0xff]   ;;  %v3220_v40 = vld [vmem:[%s4513_s2 + $0x124] ss:$24 sps:$4 sm:$0xff]  }
  0x26   : > { %v3223_v41 = vld [vmem:[%s4513_s2 + $0x424] ss:$24 sps:$4 sm:$0xff]   ;;  %v3218_v42 = vld [vmem:[%s4513_s2 + $0x120] ss:$24 sps:$4 sm:$0xff]   ;;  %v3226_v44 = vld [vmem:[%s4513_s2 + $0xf4] ss:$24 sps:$4 sm:$0xff]  }
  0x27   : > { %v3221_v43 = vld [vmem:[%s4513_s2 + $0x420] ss:$24 sps:$4 sm:$0xff]   ;;  %v3229_v45 = vld [vmem:[%s4513_s2 + $0x3f4] ss:$24 sps:$4 sm:$0xff]   ;;  %v3224_v47 = vld [vmem:[%s4513_s2 + $0xf0] ss:$24 sps:$4 sm:$0xff]  }
  0x28   : > { %470 = vmatpush1.bf16.msra.mxu0 %v3178_v17  ;;  %583 = vmatpush1.bf16.msra.mxu1 %v3179_v18  ;;  %v3205_v46 = vld [vmem:[%s3599_s26 + $0x8] sm:$0xff]   ;;  %v3232_v49 = vld [vmem:[%s4513_s2 + $0xc4] ss:$24 sps:$4 sm:$0xff]   ;;  %v3230_v51 = vld [vmem:[%s4513_s2 + $0xc0] ss:$24 sps:$4 sm:$0xff]  }
  0x29   : > { %471 = vmatprep.subr.bf16.mxu0 %v3180_v19  ;;  %584 = vmatprep.subr.bf16.mxu1 %v3182_v20  ;;  %v3227_v48 = vld [vmem:[%s4513_s2 + $0x3f0] ss:$24 sps:$4 sm:$0xff]   ;;  %v3235_v50 = vld [vmem:[%s4513_s2 + $0x3c4] ss:$24 sps:$4 sm:$0xff]   ;;  %v3233_v52 = vld [vmem:[%s4513_s2 + $0x3c0] ss:$24 sps:$4 sm:$0xff]  }
  0x2a   : > { %v3238_v53 = vld [vmem:[%s4513_s2 + $0x94] ss:$24 sps:$4 sm:$0xff]   ;;  %v3236_v56 = vld [vmem:[%s4513_s2 + $0x90] ss:$24 sps:$4 sm:$0xff]   ;;  %v3244_v58 = vld [vmem:[%s4513_s2 + $0x64] ss:$24 sps:$4 sm:$0xff]  }
  0x2b   : > { %v3241_v54 = vld [vmem:[%s4513_s2 + $0x394] ss:$24 sps:$4 sm:$0xff]   ;;  %v3239_v57 = vld [vmem:[%s4513_s2 + $0x390] ss:$24 sps:$4 sm:$0xff]   ;;  %v3247_v59 = vld [vmem:[%s4513_s2 + $0x364] ss:$24 sps:$4 sm:$0xff]  }
  0x2c   : > { %472 = vmatpush1.bf16.msra.mxu0 %v3184_v21  ;;  %585 = vmatpush1.bf16.msra.mxu1 %v3185_v22  ;;  %v3206_v55 = vld [vmem:[%s3599_s26 + $0x10] sm:$0xff]   ;;  %v3242_v60 = vld [vmem:[%s4513_s2 + $0x60] ss:$24 sps:$4 sm:$0xff]   ;;  %v3256_v3 = vld [vmem:[%s4513_s2 + $0x4] ss:$24 sps:$4 sm:$0xff]  }
  0x2d   : > { %473 = vmatprep.subr.bf16.mxu0 %v3186_v23  ;;  %586 = vmatprep.subr.bf16.mxu1 %v3188_v24  ;;  %v3245_v61 = vld [vmem:[%s4513_s2 + $0x360] ss:$24 sps:$4 sm:$0xff]   ;;  %v3250_v62 = vld [vmem:[%s4513_s2 + $0x34] ss:$24 sps:$4 sm:$0xff]   ;;  %v3248_v1 = vld [vmem:[%s4513_s2 + $0x30] ss:$24 sps:$4 sm:$0xff]  }
  0x2e   : > { %v3253_v63 = vld [vmem:[%s4513_s2 + $0x334] ss:$24 sps:$4 sm:$0xff]   ;;  %v3207_v0 = vld [vmem:[%s3599_s26 + $0x18] sm:$0xff]   ;;  %v3251_v2 = vld [vmem:[%s4513_s2 + $0x330] ss:$24 sps:$4 sm:$0xff]  }
  0x2f   : > { %v3259_v5 = vld [vmem:[%s4513_s2 + $0x304] ss:$24 sps:$4 sm:$0xff]   ;;  %v3254_v6 = vld [vmem:[%s4513_s2] ss:$24 sps:$4 sm:$0xff]   ;;  %v3262_v8 = vld [vmem:[%s4513_s2 + $0x2d4] ss:$24 sps:$4 sm:$0xff]  }
  0x30   : > { %474 = vmatpush1.bf16.msra.mxu0 %v3190_v25  ;;  %587 = vmatpush1.bf16.msra.mxu1 %v3191_v26  ;;  %v3257_v7 = vld [vmem:[%s4513_s2 + $0x300] ss:$24 sps:$4 sm:$0xff]   ;;  %v3265_v9 = vld [vmem:[%s4513_s2 + $0x5d4] ss:$24 sps:$4 sm:$0xff]   ;;  %v3260_v11 = vld [vmem:[%s4513_s2 + $0x2d0] ss:$24 sps:$4 sm:$0xff]  }
  0x31   : > { %475 = vmatprep.subr.bf16.mxu0 %v3192_v27  ;;  %588 = vmatprep.subr.bf16.mxu1 %v3194_v28  ;;  %v3208_v10 = vld [vmem:[%s3599_s26 + $0x20] sm:$0xff]   ;;  %v3263_v12 = vld [vmem:[%s4513_s2 + $0x5d0] ss:$24 sps:$4 sm:$0xff]   ;;  %v3274_v17 = vld [vmem:[%s4513_s2 + $0x274] ss:$24 sps:$4 sm:$0xff]  }
  0x32   : > { %v3268_v13 = vld [vmem:[%s4513_s2 + $0x2a4] ss:$24 sps:$4 sm:$0xff]   ;;  %v3266_v15 = vld [vmem:[%s4513_s2 + $0x2a0] ss:$24 sps:$4 sm:$0xff]   ;;  %v3277_v18 = vld [vmem:[%s4513_s2 + $0x574] ss:$24 sps:$4 sm:$0xff]  }
  0x33   : > { %v3271_v14 = vld [vmem:[%s4513_s2 + $0x5a4] ss:$24 sps:$4 sm:$0xff]   ;;  %v3269_v16 = vld [vmem:[%s4513_s2 + $0x5a0] ss:$24 sps:$4 sm:$0xff]   ;;  %v3209_v19 = vld [vmem:[%s3599_s26 + $0x28] sm:$0xff]  }
  0x34   : > { %476 = vmatpush1.bf16.msra.mxu0 %v3196_v29  ;;  %589 = vmatpush1.bf16.msra.mxu1 %v3197_v30  ;;  %v3272_v20 = vld [vmem:[%s4513_s2 + $0x270] ss:$24 sps:$4 sm:$0xff]   ;;  %v3280_v22 = vld [vmem:[%s4513_s2 + $0x244] ss:$24 sps:$4 sm:$0xff]   ;;  %v3278_v24 = vld [vmem:[%s4513_s2 + $0x240] ss:$24 sps:$4 sm:$0xff]  }
  0x35   : > { %477 = vmatprep.subr.bf16.mxu0 %v3198_v31  ;;  %590 = vmatprep.subr.bf16.mxu1 %v3200_v32  ;;  %v3275_v21 = vld [vmem:[%s4513_s2 + $0x570] ss:$24 sps:$4 sm:$0xff]   ;;  %v3283_v23 = vld [vmem:[%s4513_s2 + $0x544] ss:$24 sps:$4 sm:$0xff]   ;;  %v3281_v25 = vld [vmem:[%s4513_s2 + $0x540] ss:$24 sps:$4 sm:$0xff]  }
  0x36   : > { %v3286_v26 = vld [vmem:[%s4513_s2 + $0x214] ss:$24 sps:$4 sm:$0xff]   ;;  %v3284_v29 = vld [vmem:[%s4513_s2 + $0x210] ss:$24 sps:$4 sm:$0xff]   ;;  %v3292_v31 = vld [vmem:[%s4513_s2 + $0x1e4] ss:$24 sps:$4 sm:$0xff]  }
  0x37   : > { %v3289_v27 = vld [vmem:[%s4513_s2 + $0x514] ss:$24 sps:$4 sm:$0xff]   ;;  %v3287_v30 = vld [vmem:[%s4513_s2 + $0x510] ss:$24 sps:$4 sm:$0xff]   ;;  %v3295_v32 = vld [vmem:[%s4513_s2 + $0x4e4] ss:$24 sps:$4 sm:$0xff]  }
  0x38   : > { %478 = vmatpush1.bf16.msra.mxu0 %v3202_v33  ;;  %591 = vmatpush1.bf16.msra.mxu1 %v3203_v34  ;;  %v3210_v28 = vld [vmem:[%s3599_s26 + $0x30] sm:$0xff]   ;;  %v3290_v33 = vld [vmem:[%s4513_s2 + $0x1e0] ss:$24 sps:$4 sm:$0xff]  }
  0x39   : > { %1937 = vmatprep.subr.bf16.mxu0 %v3214_v35  ;;  %2050 = vmatprep.subr.bf16.mxu1 %v3217_v37  ;;  %v3293_v34 = vld [vmem:[%s4513_s2 + $0x4e0] ss:$24 sps:$4 sm:$0xff]   ;;  %v3301_v37 = vld [vmem:[%s4513_s2 + $0x4b4] ss:$24 sps:$4 sm:$0xff]  }
  0x3a   : > { %v3211_v35 = vld [vmem:[%s3599_s26 + $0x38] sm:$0xff]  }
  0x3b   : > { %496 = vmatmul.mubr.bf16.vlgmr.msra.gmra.mxu0 %v3204_v36  ;;  %609 = vmatmul.mubr.bf16.vlgmr.msra.gmra.mxu1 %v3204_v36  ;;  %v3298_v36 = vld [vmem:[%s4513_s2 + $0x1b4] ss:$24 sps:$4 sm:$0xff]  }
  0x3c   : > { %505 = vmatprep.mubr.bf16.mxu0 %v3541_v4  ;;  %618 = vmatprep.mubr.bf16.mxu1 %v3541_v4 }
  0x3d   : > { %1938 = vmatpush1.bf16.msra.mxu0 %v3212_v38  ;;  %2051 = vmatpush1.bf16.msra.mxu1 %v3215_v39  ;;  %v3299_v38 = vld [vmem:[%s4513_s2 + $0x4b0] ss:$24 sps:$4 sm:$0xff]   ;;  %v3304_v39 = vld [vmem:[%s4513_s2 + $0x184] ss:$24 sps:$4 sm:$0xff]  }
  0x3e   : > { %1939 = vmatprep.subr.bf16.mxu0 %v3220_v40  ;;  %2052 = vmatprep.subr.bf16.mxu1 %v3223_v41  ;;  %v3307_v40 = vld [vmem:[%s4513_s2 + $0x484] ss:$24 sps:$4 sm:$0xff]   ;;  %v3302_v41 = vld [vmem:[%s4513_s2 + $0x180] ss:$24 sps:$4 sm:$0xff]  }
  0x41   : > { %1940 = vmatpush1.bf16.msra.mxu0 %v3218_v42  ;;  %2053 = vmatpush1.bf16.msra.mxu1 %v3221_v43  ;;  %v3305_v42 = vld [vmem:[%s4513_s2 + $0x480] ss:$24 sps:$4 sm:$0xff]   ;;  %v3310_v43 = vld [vmem:[%s4513_s2 + $0x15c] ss:$24 sps:$4 sm:$0xff]  }
  0x42   : > { %1941 = vmatprep.subr.bf16.mxu0 %v3226_v44  ;;  %2054 = vmatprep.subr.bf16.mxu1 %v3229_v45  ;;  %v3313_v44 = vld [vmem:[%s4513_s2 + $0x45c] ss:$24 sps:$4 sm:$0xff]  }
  0x43   : > { %506 = vmatmul.mubr.bf16.gmra.mxu0 %v3205_v46  ;;  %619 = vmatmul.mubr.bf16.gmra.mxu1 %v3205_v46 }
  0x44   : > { %515 = vmatprep.mubr.bf16.mxu0 %v3541_v4  ;;  %628 = vmatprep.mubr.bf16.mxu1 %v3541_v4 }
  0x45   : > { %1942 = vmatpush1.bf16.msra.mxu0 %v3224_v47  ;;  %2055 = vmatpush1.bf16.msra.mxu1 %v3227_v48 }
  0x46   : > { %1943 = vmatprep.subr.bf16.mxu0 %v3232_v49  ;;  %2056 = vmatprep.subr.bf16.mxu1 %v3235_v50 }
  0x49   : > { %1944 = vmatpush1.bf16.msra.mxu0 %v3230_v51  ;;  %2057 = vmatpush1.bf16.msra.mxu1 %v3233_v52 }
  0x4a   : > { %1945 = vmatprep.subr.bf16.mxu0 %v3238_v53  ;;  %2058 = vmatprep.subr.bf16.mxu1 %v3241_v54 }
  0x4b   : > { %516 = vmatmul.mubr.bf16.gmra.mxu0 %v3206_v55  ;;  %629 = vmatmul.mubr.bf16.gmra.mxu1 %v3206_v55 }
  0x4c   : > { %525 = vmatprep.mubr.bf16.mxu0 %v3541_v4  ;;  %638 = vmatprep.mubr.bf16.mxu1 %v3541_v4 }
  0x4d   : > { %1946 = vmatpush1.bf16.msra.mxu0 %v3236_v56  ;;  %2059 = vmatpush1.bf16.msra.mxu1 %v3239_v57 }
  0x4e   : > { %1947 = vmatprep.subr.bf16.mxu0 %v3244_v58  ;;  %2060 = vmatprep.subr.bf16.mxu1 %v3247_v59 }
  0x51   : > { %1948 = vmatpush1.bf16.msra.mxu0 %v3242_v60  ;;  %2061 = vmatpush1.bf16.msra.mxu1 %v3245_v61 }
  0x52   : > { %1949 = vmatprep.subr.bf16.mxu0 %v3250_v62  ;;  %2062 = vmatprep.subr.bf16.mxu1 %v3253_v63 }
  0x53   : > { %526 = vmatmul.mubr.bf16.gmra.mxu0 %v3207_v0  ;;  %639 = vmatmul.mubr.bf16.gmra.mxu1 %v3207_v0 }
  0x54   : > { %535 = vmatprep.mubr.bf16.mxu0 %v3541_v4  ;;  %648 = vmatprep.mubr.bf16.mxu1 %v3541_v4 }
  0x55   : > { %1950 = vmatpush1.bf16.msra.mxu0 %v3248_v1  ;;  %2063 = vmatpush1.bf16.msra.mxu1 %v3251_v2  ;;  %v3308_v1 = vld [vmem:[%s4513_s2 + $0x158] ss:$24 sps:$4 sm:$0xff]  }
  0x56   : > { %1951 = vmatprep.subr.bf16.mxu0 %v3256_v3  ;;  %2064 = vmatprep.subr.bf16.mxu1 %v3259_v5  ;;  %v3311_v2 = vld [vmem:[%s4513_s2 + $0x458] ss:$24 sps:$4 sm:$0xff]  }
  0x59   : > { %1952 = vmatpush1.bf16.msra.mxu0 %v3254_v6  ;;  %2065 = vmatpush1.bf16.msra.mxu1 %v3257_v7 }
  0x5a   : > { %1953 = vmatprep.subr.bf16.mxu0 %v3262_v8  ;;  %2066 = vmatprep.subr.bf16.mxu1 %v3265_v9  ;;  %v3316_v8 = vld [vmem:[%s4513_s2 + $0x12c] ss:$24 sps:$4 sm:$0xff]  }
  0x5b   : > { %536 = vmatmul.mubr.bf16.gmra.mxu0 %v3208_v10  ;;  %649 = vmatmul.mubr.bf16.gmra.mxu1 %v3208_v10  ;;  %v3319_v9 = vld [vmem:[%s4513_s2 + $0x42c] ss:$24 sps:$4 sm:$0xff]  }
  0x5c   : > { %545 = vmatprep.mubr.bf16.mxu0 %v3541_v4  ;;  %658 = vmatprep.mubr.bf16.mxu1 %v3541_v4 }
  0x5d   : > { %1954 = vmatpush2.bf16.msra.mxu0 %v3260_v11  ;;  %2067 = vmatpush2.bf16.msra.mxu1 %v3263_v12  ;;  %v3314_v12 = vld [vmem:[%s4513_s2 + $0x128] ss:$24 sps:$4 sm:$0xff]  }
  0x5e   : > { %1955 = vmatprep.subr.bf16.mxu0 %v3268_v13  ;;  %2068 = vmatprep.subr.bf16.mxu1 %v3271_v14  ;;  %v3317_v13 = vld [vmem:[%s4513_s2 + $0x428] ss:$24 sps:$4 sm:$0xff]  }
  0x61   : > { %1956 = vmatpush2.bf16.msra.mxu0 %v3266_v15  ;;  %2069 = vmatpush2.bf16.msra.mxu1 %v3269_v16 }
  0x62   : > { %1957 = vmatprep.subr.bf16.mxu0 %v3274_v17  ;;  %2070 = vmatprep.subr.bf16.mxu1 %v3277_v18  ;;  %v3322_v18 = vld [vmem:[%s4513_s2 + $0xfc] ss:$24 sps:$4 sm:$0xff]  }
  0x63   : > { %546 = vmatmul.mubr.bf16.gmra.mxu0 %v3209_v19  ;;  %659 = vmatmul.mubr.bf16.gmra.mxu1 %v3209_v19  ;;  %v3325_v19 = vld [vmem:[%s4513_s2 + $0x3fc] ss:$24 sps:$4 sm:$0xff]  }
  0x64   : > { %555 = vmatprep.mubr.bf16.mxu0 %v3541_v4  ;;  %668 = vmatprep.mubr.bf16.mxu1 %v3541_v4 }
  0x65   : > { %1958 = vmatpush2.bf16.msra.mxu0 %v3272_v20  ;;  %2071 = vmatpush2.bf16.msra.mxu1 %v3275_v21 }
  0x66   : > { %1959 = vmatprep.subr.bf16.mxu0 %v3280_v22  ;;  %2072 = vmatprep.subr.bf16.mxu1 %v3283_v23 }
  0x69   : > { %1960 = vmatpush2.bf16.msra.mxu0 %v3278_v24  ;;  %2073 = vmatpush2.bf16.msra.mxu1 %v3281_v25 }
  0x6a   : > { %1961 = vmatprep.subr.bf16.mxu0 %v3286_v26  ;;  %2074 = vmatprep.subr.bf16.mxu1 %v3289_v27 }
  0x6b   : > { %556 = vmatmul.mubr.bf16.gmra.mxu0 %v3210_v28  ;;  %669 = vmatmul.mubr.bf16.gmra.mxu1 %v3210_v28 }
  0x6c   : > { %565 = vmatprep.mubr.bf16.mxu0 %v3541_v4  ;;  %678 = vmatprep.mubr.bf16.mxu1 %v3541_v4  ;;  %v3296_v4 = vld [vmem:[%s4513_s2 + $0x1b0] ss:$24 sps:$4 sm:$0xff]  }
  0x6d   : > { %1962 = vmatpush2.bf16.msra.mxu0 %v3284_v29  ;;  %2075 = vmatpush2.bf16.msra.mxu1 %v3287_v30  ;;  %v3320_v30 = vld [vmem:[%s4513_s2 + $0xf8] ss:$24 sps:$4 sm:$0xff]  }
  0x6e   : > { %1963 = vmatprep.subr.bf16.mxu0 %v3292_v31  ;;  %2076 = vmatprep.subr.bf16.mxu1 %v3295_v32  ;;  %v3323_v31 = vld [vmem:[%s4513_s2 + $0x3f8] ss:$24 sps:$4 sm:$0xff]  }
  0x71   : > { %1964 = vmatpush2.bf16.msra.mxu0 %v3290_v33  ;;  %2077 = vmatpush2.bf16.msra.mxu1 %v3293_v34 }
  0x72   : > { %1965 = vmatprep.subr.bf16.mxu0 %v3298_v36  ;;  %2078 = vmatprep.subr.bf16.mxu1 %v3301_v37  ;;  %v3328_v36 = vld [vmem:[%s4513_s2 + $0xcc] ss:$24 sps:$4 sm:$0xff]  }
  0x73   : > { %566 = vmatmul.mubr.bf16.gmra.mxu0 %v3211_v35  ;;  %679 = vmatmul.mubr.bf16.gmra.mxu1 %v3211_v35  ;;  %v3331_v37 = vld [vmem:[%s4513_s2 + $0x3cc] ss:$24 sps:$4 sm:$0xff]  }
  0x75   : > { %1966 = vmatpush2.bf16.msra.mxu0 %v3296_v4  ;;  %2079 = vmatpush2.bf16.msra.mxu1 %v3299_v38 }
  0x76   : > { %1967 = vmatprep.subr.bf16.mxu0 %v3304_v39  ;;  %2080 = vmatprep.subr.bf16.mxu1 %v3307_v40  ;;  %v3326_v39 = vld [vmem:[%s4513_s2 + $0xc8] ss:$24 sps:$4 sm:$0xff]  }
  0x77   : > { %v3329_v40 = vld [vmem:[%s4513_s2 + $0x3c8] ss:$24 sps:$4 sm:$0xff]  }
  0x79   : > { %1968 = vmatpush2.bf16.msra.mxu0 %v3302_v41  ;;  %2081 = vmatpush2.bf16.msra.mxu1 %v3305_v42 }
  0x7a   : > { %2163 = vmatprep.subr.bf16.mxu0 %v3310_v43  ;;  %2276 = vmatprep.subr.bf16.mxu1 %v3313_v44 }
  0xfb   : > { %v497_v45 = vpop.f32.mrf.mxu0  ;;  %v610_v46 = vpop.f32.mrf.mxu1 }
  0xfc   : > { %v689_v59 = vmax.f32 %v497_v45, 0.0  ;;  %v691_v60 = vmax.f32 %v610_v46, 0.0  ;;  %v3334_v45 = vld [vmem:[%s4513_s2 + $0x9c] ss:$24 sps:$4 sm:$0xff]  }
  0xfd   : > { %v499_v47 = vpop.f32.mrf.mxu0  ;;  %v612_v48 = vpop.f32.mrf.mxu1  ;;  %v3337_v46 = vld [vmem:[%s4513_s2 + $0x39c] ss:$24 sps:$4 sm:$0xff]  }
  0xfe   : > { %v690_v55 = vmax.f32 %v499_v47, 0.0  ;;  %v692_v56 = vmax.f32 %v612_v48, 0.0 }
  0xff   : > { %v501_v49 = vpop.f32.mrf.mxu0  ;;  %v614_v50 = vpop.f32.mrf.mxu1 }
 0x100   : > { %v693_v51 = vmax.f32 %v501_v49, 0.0  ;;  %v695_v52 = vmax.f32 %v614_v50, 0.0 }
 0x101   : > { %v503_v53 = vpop.f32.mrf.mxu0  ;;  %v616_v54 = vpop.f32.mrf.mxu1 }
 0x102   : > { %v694_v57 = vmax.f32 %v503_v53, 0.0  ;;  %v696_v58 = vmax.f32 %v616_v54, 0.0  ;;  %v3936_v3 = vpack.c.bf16 %v693_v51, %v689_v59  ;;  %v3938_v5 = vpack.c.bf16 %v695_v52, %v691_v60 }
 0x103   : > { %v507_v61 = vpop.f32.mrf.mxu0  ;;  %v620_v62 = vpop.f32.mrf.mxu1 }
 0x104   : > { %v3926_v63 = vpack.c.bf16 %v694_v57, %v690_v55  ;;  %v3928_v0 = vpack.c.bf16 %v696_v58, %v692_v56  ;;  %v697_v24 = vmax.f32 %v507_v61, 0.0  ;;  %v699_v25 = vmax.f32 %v620_v62, 0.0  ;;  %v3332_v57 = vld [vmem:[%s4513_s2 + $0x98] ss:$24 sps:$4 sm:$0xff]  }
 0x105   : > { %v509_v6 = vpop.f32.mrf.mxu0  ;;  %v622_v7 = vpop.f32.mrf.mxu1  ;;  %v3335_v58 = vld [vmem:[%s4513_s2 + $0x398] ss:$24 sps:$4 sm:$0xff]  }
 0x106   : > { %1969 = vmatprep.mubr.bf16.mxu0 %v3926_v63  ;;  %2082 = vmatprep.mubr.bf16.mxu1 %v3928_v0  ;;  %v698_v20 = vmax.f32 %v509_v6, 0.0  ;;  %v700_v21 = vmax.f32 %v622_v7, 0.0 }
 0x107   : > { %v511_v10 = vpop.f32.mrf.mxu0  ;;  %v624_v11 = vpop.f32.mrf.mxu1  ;;  %1970 = vmatmul.mubr.bf16.vlgmr.msra.gmra.mxu0 %v3936_v3  ;;  %2083 = vmatmul.mubr.bf16.vlgmr.msra.gmra.mxu1 %v3938_v5 }
 0x108   : > { %2164 = vmatpush1.bf16.msra.mxu0 %v3308_v1  ;;  %2277 = vmatpush1.bf16.msra.mxu1 %v3311_v2  ;;  %v701_v14 = vmax.f32 %v511_v10, 0.0  ;;  %v703_v15 = vmax.f32 %v624_v11, 0.0  ;;  %v3340_v1 = vld [vmem:[%s4513_s2 + $0x6c] ss:$24 sps:$4 sm:$0xff]  }
 0x109   : > { %v513_v16 = vpop.f32.mrf.mxu0  ;;  %v626_v17 = vpop.f32.mrf.mxu1  ;;  %2165 = vmatprep.subr.bf16.mxu0 %v3316_v8  ;;  %2278 = vmatprep.subr.bf16.mxu1 %v3319_v9  ;;  %v3343_v2 = vld [vmem:[%s4513_s2 + $0x36c] ss:$24 sps:$4 sm:$0xff]   ;;  %v3338_v8 = vld [vmem:[%s4513_s2 + $0x68] ss:$24 sps:$4 sm:$0xff]  }
 0x10a   : > { %v702_v22 = vmax.f32 %v513_v16, 0.0  ;;  %v704_v23 = vmax.f32 %v626_v17, 0.0  ;;  %v3972_v32 = vpack.c.bf16 %v701_v14, %v697_v24  ;;  %v3974_v33 = vpack.c.bf16 %v703_v15, %v699_v25  ;;  %v3341_v9 = vld [vmem:[%s4513_s2 + $0x368] ss:$24 sps:$4 sm:$0xff]   ;;  %v3346_v14 = vld [vmem:[%s4513_s2 + $0x3c] ss:$24 sps:$4 sm:$0xff]  }
 0x10b   : > { %v517_v26 = vpop.f32.mrf.mxu0  ;;  %v630_v27 = vpop.f32.mrf.mxu1  ;;  %v3349_v15 = vld [vmem:[%s4513_s2 + $0x33c] ss:$24 sps:$4 sm:$0xff]  }
 0x10c   : > { %v3962_v28 = vpack.c.bf16 %v702_v22, %v698_v20  ;;  %v3964_v29 = vpack.c.bf16 %v704_v23, %v700_v21  ;;  %2166 = vmatpush1.bf16.msra.mxu0 %v3314_v12  ;;  %2279 = vmatpush1.bf16.msra.mxu1 %v3317_v13  ;;  %v705_v51 = vmax.f32 %v517_v26, 0.0  ;;  %v707_v52 = vmax.f32 %v630_v27, 0.0  ;;  %v3344_v26 = vld [vmem:[%s4513_s2 + $0x38] ss:$24 sps:$4 sm:$0xff]  }
 0x10d   : > { %v519_v34 = vpop.f32.mrf.mxu0  ;;  %v632_v35 = vpop.f32.mrf.mxu1  ;;  %2167 = vmatprep.subr.bf16.mxu0 %v3322_v18  ;;  %2280 = vmatprep.subr.bf16.mxu1 %v3325_v19  ;;  %v3347_v27 = vld [vmem:[%s4513_s2 + $0x338] ss:$24 sps:$4 sm:$0xff]  }
 0x10e   : > { %1979 = vmatprep.mubr.bf16.mxu0 %v3962_v28  ;;  %2092 = vmatprep.mubr.bf16.mxu1 %v3964_v29  ;;  %v706_v47 = vmax.f32 %v519_v34, 0.0  ;;  %v708_v48 = vmax.f32 %v632_v35, 0.0 }
 0x10f   : > { %v521_v4 = vpop.f32.mrf.mxu0  ;;  %v634_v38 = vpop.f32.mrf.mxu1  ;;  %1980 = vmatmul.mubr.bf16.gmra.mxu0 %v3972_v32  ;;  %2093 = vmatmul.mubr.bf16.gmra.mxu1 %v3974_v33 }
 0x110   : > { %2168 = vmatpush1.bf16.msra.mxu0 %v3320_v30  ;;  %2281 = vmatpush1.bf16.msra.mxu1 %v3323_v31  ;;  %v709_v41 = vmax.f32 %v521_v4, 0.0  ;;  %v711_v42 = vmax.f32 %v634_v38, 0.0 }
 0x111   : > { %v523_v43 = vpop.f32.mrf.mxu0  ;;  %v636_v44 = vpop.f32.mrf.mxu1  ;;  %2169 = vmatprep.subr.bf16.mxu0 %v3328_v36  ;;  %2282 = vmatprep.subr.bf16.mxu1 %v3331_v37  ;;  %v3352_v36 = vld [vmem:[%s4513_s2 + $0xc] ss:$24 sps:$4 sm:$0xff]  }
 0x112   : > { %v710_v49 = vmax.f32 %v523_v43, 0.0  ;;  %v712_v50 = vmax.f32 %v636_v44, 0.0  ;;  %v4008_v59 = vpack.c.bf16 %v709_v41, %v705_v51  ;;  %v4010_v60 = vpack.c.bf16 %v711_v42, %v707_v52  ;;  %v3355_v37 = vld [vmem:[%s4513_s2 + $0x30c] ss:$24 sps:$4 sm:$0xff]  }
 0x113   : > { %v527_v53 = vpop.f32.mrf.mxu0  ;;  %v640_v54 = vpop.f32.mrf.mxu1 }
 0x114   : > { %v3998_v55 = vpack.c.bf16 %v710_v49, %v706_v47  ;;  %v4000_v56 = vpack.c.bf16 %v712_v50, %v708_v48  ;;  %2170 = vmatpush1.bf16.msra.mxu0 %v3326_v39  ;;  %2283 = vmatpush1.bf16.msra.mxu1 %v3329_v40  ;;  %v713_v20 = vmax.f32 %v527_v53, 0.0  ;;  %v715_v21 = vmax.f32 %v640_v54, 0.0  ;;  %v3350_v39 = vld [vmem:[%s4513_s2 + $0x8] ss:$24 sps:$4 sm:$0xff]  }
 0x115   : > { %v529_v61 = vpop.f32.mrf.mxu0  ;;  %v642_v62 = vpop.f32.mrf.mxu1  ;;  %2171 = vmatprep.subr.bf16.mxu0 %v3334_v45  ;;  %2284 = vmatprep.subr.bf16.mxu1 %v3337_v46  ;;  %v3353_v40 = vld [vmem:[%s4513_s2 + $0x308] ss:$24 sps:$4 sm:$0xff]   ;;  %v3358_v45 = vld [vmem:[%s4513_s2 + $0x2dc] ss:$24 sps:$4 sm:$0xff]  }
 0x116   : > { %1989 = vmatprep.mubr.bf16.mxu0 %v3998_v55  ;;  %2102 = vmatprep.mubr.bf16.mxu1 %v4000_v56  ;;  %v714_v16 = vmax.f32 %v529_v61, 0.0  ;;  %v716_v17 = vmax.f32 %v642_v62, 0.0  ;;  %v3361_v46 = vld [vmem:[%s4513_s2 + $0x5dc] ss:$24 sps:$4 sm:$0xff]   ;;  %v3356_v61 = vld [vmem:[%s4513_s2 + $0x2d8] ss:$24 sps:$4 sm:$0xff]  }
 0x117   : > { %v531_v6 = vpop.f32.mrf.mxu0  ;;  %v644_v7 = vpop.f32.mrf.mxu1  ;;  %1990 = vmatmul.mubr.bf16.gmra.mxu0 %v4008_v59  ;;  %2103 = vmatmul.mubr.bf16.gmra.mxu1 %v4010_v60  ;;  %v3359_v62 = vld [vmem:[%s4513_s2 + $0x5d8] ss:$24 sps:$4 sm:$0xff]  }
 0x118   : > { %2172 = vmatpush1.bf16.msra.mxu0 %v3332_v57  ;;  %2285 = vmatpush1.bf16.msra.mxu1 %v3335_v58  ;;  %v717_v10 = vmax.f32 %v531_v6, 0.0  ;;  %v719_v11 = vmax.f32 %v644_v7, 0.0 }
 0x119   : > { %v533_v12 = vpop.f32.mrf.mxu0  ;;  %v646_v13 = vpop.f32.mrf.mxu1  ;;  %2173 = vmatprep.subr.bf16.mxu0 %v3340_v1  ;;  %2286 = vmatprep.subr.bf16.mxu1 %v3343_v2 }
 0x11a   : > { %v718_v18 = vmax.f32 %v533_v12, 0.0  ;;  %v720_v19 = vmax.f32 %v646_v13, 0.0  ;;  %v4044_v30 = vpack.c.bf16 %v717_v10, %v713_v20  ;;  %v4046_v31 = vpack.c.bf16 %v719_v11, %v715_v21  ;;  %v3362_v12 = vld [vmem:[%s4513_s2 + $0x2a8] ss:$24 sps:$4 sm:$0xff]  }
 0x11b   : > { %v537_v22 = vpop.f32.mrf.mxu0  ;;  %v650_v23 = vpop.f32.mrf.mxu1  ;;  %v3365_v13 = vld [vmem:[%s4513_s2 + $0x5a8] ss:$24 sps:$4 sm:$0xff]  }
 0x11c   : > { %v4034_v24 = vpack.c.bf16 %v718_v18, %v714_v16  ;;  %v4036_v25 = vpack.c.bf16 %v720_v19, %v716_v17  ;;  %2174 = vmatpush1.bf16.msra.mxu0 %v3338_v8  ;;  %2287 = vmatpush1.bf16.msra.mxu1 %v3341_v9  ;;  %v721_v51 = vmax.f32 %v537_v22, 0.0  ;;  %v723_v52 = vmax.f32 %v650_v23, 0.0  ;;  %v3364_v8 = vld [vmem:[%s4513_s2 + $0x2ac] ss:$24 sps:$4 sm:$0xff]   ;;  %v3370_v18 = vld [vmem:[%s4513_s2 + $0x27c] ss:$24 sps:$4 sm:$0xff]  }
 0x11d   : > { %v539_v34 = vpop.f32.mrf.mxu0  ;;  %v652_v35 = vpop.f32.mrf.mxu1  ;;  %2175 = vmatprep.subr.bf16.mxu0 %v3346_v14  ;;  %2288 = vmatprep.subr.bf16.mxu1 %v3349_v15  ;;  %v3367_v9 = vld [vmem:[%s4513_s2 + $0x5ac] ss:$24 sps:$4 sm:$0xff]   ;;  %v3373_v19 = vld [vmem:[%s4513_s2 + $0x57c] ss:$24 sps:$4 sm:$0xff]  }
 0x11e   : > { %1999 = vmatprep.mubr.bf16.mxu0 %v4034_v24  ;;  %2112 = vmatprep.mubr.bf16.mxu1 %v4036_v25  ;;  %v722_v47 = vmax.f32 %v539_v34, 0.0  ;;  %v724_v48 = vmax.f32 %v652_v35, 0.0 }
 0x11f   : > { %v541_v4 = vpop.f32.mrf.mxu0  ;;  %v654_v38 = vpop.f32.mrf.mxu1  ;;  %2000 = vmatmul.mubr.bf16.gmra.mxu0 %v4044_v30  ;;  %2113 = vmatmul.mubr.bf16.gmra.mxu1 %v4046_v31 }
 0x120   : > { %2176 = vmatpush1.bf16.msra.mxu0 %v3344_v26  ;;  %2289 = vmatpush1.bf16.msra.mxu1 %v3347_v27  ;;  %v725_v41 = vmax.f32 %v541_v4, 0.0  ;;  %v727_v42 = vmax.f32 %v654_v38, 0.0  ;;  %v3368_v4 = vld [vmem:[%s4513_s2 + $0x278] ss:$24 sps:$4 sm:$0xff]  }
 0x121   : > { %v543_v43 = vpop.f32.mrf.mxu0  ;;  %v656_v44 = vpop.f32.mrf.mxu1  ;;  %2177 = vmatprep.subr.bf16.mxu0 %v3352_v36  ;;  %2290 = vmatprep.subr.bf16.mxu1 %v3355_v37  ;;  %v3371_v38 = vld [vmem:[%s4513_s2 + $0x578] ss:$24 sps:$4 sm:$0xff]  }
 0x122   : > { %v726_v49 = vmax.f32 %v543_v43, 0.0  ;;  %v728_v50 = vmax.f32 %v656_v44, 0.0  ;;  %v4080_v1 = vpack.c.bf16 %v725_v41, %v721_v51  ;;  %v4082_v2 = vpack.c.bf16 %v727_v42, %v723_v52  ;;  %v3376_v43 = vld [vmem:[%s4513_s2 + $0x24c] ss:$24 sps:$4 sm:$0xff]  }
 0x123   : > { %v547_v53 = vpop.f32.mrf.mxu0  ;;  %v660_v54 = vpop.f32.mrf.mxu1  ;;  %v3379_v44 = vld [vmem:[%s4513_s2 + $0x54c] ss:$24 sps:$4 sm:$0xff]  }
 0x124   : > { %v4070_v57 = vpack.c.bf16 %v726_v49, %v722_v47  ;;  %v4072_v58 = vpack.c.bf16 %v728_v50, %v724_v48  ;;  %2178 = vmatpush1.bf16.msra.mxu0 %v3350_v39  ;;  %2291 = vmatpush1.bf16.msra.mxu1 %v3353_v40  ;;  %v729_v26 = vmax.f32 %v547_v53, 0.0  ;;  %v731_v27 = vmax.f32 %v660_v54, 0.0  ;;  %v3374_v47 = vld [vmem:[%s4513_s2 + $0x248] ss:$24 sps:$4 sm:$0xff]   ;;  %v3382_v53 = vld [vmem:[%s4513_s2 + $0x21c] ss:$24 sps:$4 sm:$0xff]  }
 0x125   : > { %v549_v6 = vpop.f32.mrf.mxu0  ;;  %v662_v7 = vpop.f32.mrf.mxu1  ;;  %2179 = vmatprep.subr.bf16.mxu0 %v3358_v45  ;;  %2292 = vmatprep.subr.bf16.mxu1 %v3361_v46  ;;  %v3377_v48 = vld [vmem:[%s4513_s2 + $0x548] ss:$24 sps:$4 sm:$0xff]   ;;  %v3385_v54 = vld [vmem:[%s4513_s2 + $0x51c] ss:$24 sps:$4 sm:$0xff]  }
 0x126   : > { %2009 = vmatprep.mubr.bf16.mxu0 %v4070_v57  ;;  %2122 = vmatprep.mubr.bf16.mxu1 %v4072_v58  ;;  %v730_v20 = vmax.f32 %v549_v6, 0.0  ;;  %v732_v21 = vmax.f32 %v662_v7, 0.0 }
 0x127   : > { %v551_v10 = vpop.f32.mrf.mxu0  ;;  %v664_v11 = vpop.f32.mrf.mxu1  ;;  %2010 = vmatmul.mubr.bf16.gmra.mxu0 %v4080_v1  ;;  %2123 = vmatmul.mubr.bf16.gmra.mxu1 %v4082_v2 }
 0x128   : > { %2180 = vmatpush2.bf16.msra.mxu0 %v3356_v61  ;;  %2293 = vmatpush2.bf16.msra.mxu1 %v3359_v62  ;;  %v733_v14 = vmax.f32 %v551_v10, 0.0  ;;  %v735_v15 = vmax.f32 %v664_v11, 0.0 }
 0x129   : > { %v553_v16 = vpop.f32.mrf.mxu0  ;;  %v666_v17 = vpop.f32.mrf.mxu1  ;;  %2181 = vmatprep.subr.bf16.mxu0 %v3364_v8  ;;  %2294 = vmatprep.subr.bf16.mxu1 %v3367_v9 }
 0x12a   : > { %v734_v22 = vmax.f32 %v553_v16, 0.0  ;;  %v736_v23 = vmax.f32 %v666_v17, 0.0  ;;  %v4116_v39 = vpack.c.bf16 %v733_v14, %v729_v26  ;;  %v4118_v40 = vpack.c.bf16 %v735_v15, %v731_v27  ;;  %v3380_v14 = vld [vmem:[%s4513_s2 + $0x218] ss:$24 sps:$4 sm:$0xff]   ;;  %v3386_v26 = vld [vmem:[%s4513_s2 + $0x1e8] ss:$24 sps:$4 sm:$0xff]  }
 0x12b   : > { %v557_v34 = vpop.f32.mrf.mxu0  ;;  %v670_v35 = vpop.f32.mrf.mxu1  ;;  %v3383_v15 = vld [vmem:[%s4513_s2 + $0x518] ss:$24 sps:$4 sm:$0xff]   ;;  %v3389_v27 = vld [vmem:[%s4513_s2 + $0x4e8] ss:$24 sps:$4 sm:$0xff]  }
 0x12c   : > { %v4106_v36 = vpack.c.bf16 %v734_v22, %v730_v20  ;;  %v4108_v37 = vpack.c.bf16 %v736_v23, %v732_v21  ;;  %2182 = vmatpush2.bf16.msra.mxu0 %v3362_v12  ;;  %2295 = vmatpush2.bf16.msra.mxu1 %v3365_v13  ;;  %v737_v8 = vmax.f32 %v557_v34, 0.0  ;;  %v739_v9 = vmax.f32 %v670_v35, 0.0  ;;  %v3388_v20 = vld [vmem:[%s4513_s2 + $0x1ec] ss:$24 sps:$4 sm:$0xff]  }
 0x12d   : > { %v559_v41 = vpop.f32.mrf.mxu0  ;;  %v672_v42 = vpop.f32.mrf.mxu1  ;;  %2183 = vmatprep.subr.bf16.mxu0 %v3370_v18  ;;  %2296 = vmatprep.subr.bf16.mxu1 %v3373_v19  ;;  %v3391_v21 = vld [vmem:[%s4513_s2 + $0x4ec] ss:$24 sps:$4 sm:$0xff]  }
 0x12e   : > { %2019 = vmatprep.mubr.bf16.mxu0 %v4106_v36  ;;  %2132 = vmatprep.mubr.bf16.mxu1 %v4108_v37  ;;  %v738_v61 = vmax.f32 %v559_v41, 0.0  ;;  %v740_v62 = vmax.f32 %v672_v42, 0.0  ;;  %v3394_v41 = vld [vmem:[%s4513_s2 + $0x1bc] ss:$24 sps:$4 sm:$0xff]  }
 0x12f   : > { %v561_v45 = vpop.f32.mrf.mxu0  ;;  %v674_v46 = vpop.f32.mrf.mxu1  ;;  %2020 = vmatmul.mubr.bf16.gmra.mxu0 %v4116_v39  ;;  %2133 = vmatmul.mubr.bf16.gmra.mxu1 %v4118_v40  ;;  %v3397_v42 = vld [vmem:[%s4513_s2 + $0x4bc] ss:$24 sps:$4 sm:$0xff]  }
 0x130   : > { %2184 = vmatpush2.bf16.msra.mxu0 %v3368_v4  ;;  %2297 = vmatpush2.bf16.msra.mxu1 %v3371_v38  ;;  %v741_v49 = vmax.f32 %v561_v45, 0.0  ;;  %v743_v50 = vmax.f32 %v674_v46, 0.0 }
 0x131   : > { %v563_v51 = vpop.f32.mrf.mxu0  ;;  %v676_v52 = vpop.f32.mrf.mxu1  ;;  %2185 = vmatprep.subr.bf16.mxu0 %v3376_v43  ;;  %2298 = vmatprep.subr.bf16.mxu1 %v3379_v44 }
 0x132   : > { %v742_v6 = vmax.f32 %v563_v51, 0.0  ;;  %v744_v7 = vmax.f32 %v676_v52, 0.0  ;;  %v4152_v16 = vpack.c.bf16 %v741_v49, %v737_v8  ;;  %v4154_v17 = vpack.c.bf16 %v743_v50, %v739_v9  ;;  %v3392_v51 = vld [vmem:[%s4513_s2 + $0x1b8] ss:$24 sps:$4 sm:$0xff]   ;;  %v3406_v8 = vld [vmem:[%s4513_s2 + $0x164] ss:$24 sps:$4 sm:$0xff]  }
 0x133   : > { %v567_v10 = vpop.f32.mrf.mxu0  ;;  %v680_v11 = vpop.f32.mrf.mxu1  ;;  %v3395_v52 = vld [vmem:[%s4513_s2 + $0x4b8] ss:$24 sps:$4 sm:$0xff]   ;;  %v3409_v9 = vld [vmem:[%s4513_s2 + $0x464] ss:$24 sps:$4 sm:$0xff]  }
 0x134   : > { %v4142_v12 = vpack.c.bf16 %v742_v6, %v738_v61  ;;  %v4144_v13 = vpack.c.bf16 %v744_v7, %v740_v62  ;;  %2186 = vmatpush2.bf16.msra.mxu0 %v3374_v47  ;;  %2299 = vmatpush2.bf16.msra.mxu1 %v3377_v48  ;;  %v745_v47 = vmax.f32 %v567_v10, 0.0  ;;  %v747_v48 = vmax.f32 %v680_v11, 0.0  ;;  %v3400_v61 = vld [vmem:[%s4513_s2 + $0x18c] ss:$24 sps:$4 sm:$0xff]   ;;  %v3398_v6 = vld [vmem:[%s4513_s2 + $0x188] ss:$24 sps:$4 sm:$0xff]  }
 0x135   : > { %v569_v18 = vpop.f32.mrf.mxu0  ;;  %v682_v19 = vpop.f32.mrf.mxu1  ;;  %2187 = vmatprep.subr.bf16.mxu0 %v3382_v53  ;;  %2300 = vmatprep.subr.bf16.mxu1 %v3385_v54  ;;  %v3403_v62 = vld [vmem:[%s4513_s2 + $0x48c] ss:$24 sps:$4 sm:$0xff]   ;;  %v3401_v7 = vld [vmem:[%s4513_s2 + $0x488] ss:$24 sps:$4 sm:$0xff]  }
 0x136   : > { %2029 = vmatprep.mubr.bf16.mxu0 %v4142_v12  ;;  %2142 = vmatprep.mubr.bf16.mxu1 %v4144_v13  ;;  %v746_v43 = vmax.f32 %v569_v18, 0.0  ;;  %v748_v44 = vmax.f32 %v682_v19, 0.0  ;;  %v3404_v10 = vld [vmem:[%s4513_s2 + $0x160] ss:$24 sps:$4 sm:$0xff]   ;;  %v3410_v18 = vld [vmem:[%s4513_s2 + $0x130] ss:$24 sps:$4 sm:$0xff]  }
 0x137   : > { %v571_v22 = vpop.f32.mrf.mxu0  ;;  %v684_v23 = vpop.f32.mrf.mxu1  ;;  %2030 = vmatmul.mubr.bf16.gmra.mxu0 %v4152_v16  ;;  %2143 = vmatmul.mubr.bf16.gmra.mxu1 %v4154_v17  ;;  %v3407_v11 = vld [vmem:[%s4513_s2 + $0x460] ss:$24 sps:$4 sm:$0xff]   ;;  %v3413_v19 = vld [vmem:[%s4513_s2 + $0x430] ss:$24 sps:$4 sm:$0xff]  }
 0x138   : > { %2188 = vmatpush2.bf16.msra.mxu0 %v3380_v14  ;;  %2301 = vmatpush2.bf16.msra.mxu1 %v3383_v15  ;;  %v749_v34 = vmax.f32 %v571_v22, 0.0  ;;  %v751_v35 = vmax.f32 %v684_v23, 0.0  ;;  %v3412_v14 = vld [vmem:[%s4513_s2 + $0x134] ss:$24 sps:$4 sm:$0xff]   ;;  %v3416_v22 = vld [vmem:[%s4513_s2 + $0x100] ss:$24 sps:$4 sm:$0xff]  }
 0x139   : > { %v573_v4 = vpop.f32.mrf.mxu0  ;;  %v686_v38 = vpop.f32.mrf.mxu1  ;;  %2189 = vmatprep.subr.bf16.mxu0 %v3388_v20  ;;  %2302 = vmatprep.subr.bf16.mxu1 %v3391_v21  ;;  %v3415_v15 = vld [vmem:[%s4513_s2 + $0x434] ss:$24 sps:$4 sm:$0xff]   ;;  %v3418_v20 = vld [vmem:[%s4513_s2 + $0x104] ss:$24 sps:$4 sm:$0xff]   ;;  %v3419_v23 = vld [vmem:[%s4513_s2 + $0x400] ss:$24 sps:$4 sm:$0xff]  }
 0x13a   : > { %v750_v45 = vmax.f32 %v573_v4, 0.0  ;;  %v752_v46 = vmax.f32 %v686_v38, 0.0  ;;  %v4188_v53 = vpack.c.bf16 %v749_v34, %v745_v47  ;;  %v4190_v54 = vpack.c.bf16 %v751_v35, %v747_v48  ;;  %v3421_v21 = vld [vmem:[%s4513_s2 + $0x404] ss:$24 sps:$4 sm:$0xff]   ;;  %v3422_v34 = vld [vmem:[%s4513_s2 + $0xd0] ss:$24 sps:$4 sm:$0xff]  }
 0x13b   : > { %v3425_v35 = vld [vmem:[%s4513_s2 + $0x3d0] ss:$24 sps:$4 sm:$0xff]   ;;  %v3430_v4 = vld [vmem:[%s4513_s2 + $0xa4] ss:$24 sps:$4 sm:$0xff]  }
 0x13c   : > { %v4178_v49 = vpack.c.bf16 %v750_v45, %v746_v43  ;;  %v4180_v50 = vpack.c.bf16 %v752_v46, %v748_v44  ;;  %2190 = vmatpush2.bf16.msra.mxu0 %v3386_v26  ;;  %2303 = vmatpush2.bf16.msra.mxu1 %v3389_v27  ;;  %v3424_v26 = vld [vmem:[%s4513_s2 + $0xd4] ss:$24 sps:$4 sm:$0xff]   ;;  %v3433_v38 = vld [vmem:[%s4513_s2 + $0x3a4] ss:$24 sps:$4 sm:$0xff]   ;;  %v3434_v45 = vld [vmem:[%s4513_s2 + $0x70] ss:$24 sps:$4 sm:$0xff]  }
 0x13d   : > { %2191 = vmatprep.subr.bf16.mxu0 %v3394_v41  ;;  %2304 = vmatprep.subr.bf16.mxu1 %v3397_v42  ;;  %v3427_v27 = vld [vmem:[%s4513_s2 + $0x3d4] ss:$24 sps:$4 sm:$0xff]   ;;  %v3428_v41 = vld [vmem:[%s4513_s2 + $0xa0] ss:$24 sps:$4 sm:$0xff]   ;;  %v3437_v46 = vld [vmem:[%s4513_s2 + $0x370] ss:$24 sps:$4 sm:$0xff]  }
 0x13e   : > { %2039 = vmatprep.mubr.bf16.mxu0 %v4178_v49  ;;  %2152 = vmatprep.mubr.bf16.mxu1 %v4180_v50  ;;  %v3431_v42 = vld [vmem:[%s4513_s2 + $0x3a0] ss:$24 sps:$4 sm:$0xff]   ;;  %v3436_v43 = vld [vmem:[%s4513_s2 + $0x74] ss:$24 sps:$4 sm:$0xff]   ;;  %v3442_v47 = vld [vmem:[%s4513_s2 + $0x44] ss:$24 sps:$4 sm:$0xff]  }
 0x13f   : > { %2040 = vmatmul.mubr.bf16.gmra.mxu0 %v4188_v53  ;;  %2153 = vmatmul.mubr.bf16.gmra.mxu1 %v4190_v54  ;;  %v3439_v44 = vld [vmem:[%s4513_s2 + $0x374] ss:$24 sps:$4 sm:$0xff]   ;;  %v3445_v48 = vld [vmem:[%s4513_s2 + $0x344] ss:$24 sps:$4 sm:$0xff]  }
 0x140   : > { %2192 = vmatpush2.bf16.msra.mxu0 %v3392_v51  ;;  %2305 = vmatpush2.bf16.msra.mxu1 %v3395_v52  ;;  %v3440_v51 = vld [vmem:[%s4513_s2 + $0x40] ss:$24 sps:$4 sm:$0xff]  }
 0x141   : > { %2195 = vmatprep.mubr.bf16.mxu0 %v3926_v63  ;;  %2308 = vmatprep.mubr.bf16.mxu1 %v3928_v0  ;;  %v3443_v52 = vld [vmem:[%s4513_s2 + $0x340] ss:$24 sps:$4 sm:$0xff]  }
 0x142   : > { %2193 = vmatprep.subr.bf16.mxu0 %v3400_v61  ;;  %2306 = vmatprep.subr.bf16.mxu1 %v3403_v62  ;;  %v3448_v61 = vld [vmem:[%s4513_s2 + $0x14] ss:$24 sps:$4 sm:$0xff]  }
 0x143   : > { %v3451_v62 = vld [vmem:[%s4513_s2 + $0x314] ss:$24 sps:$4 sm:$0xff]  }
 0x144   : > { %2194 = vmatpush2.bf16.msra.mxu0 %v3398_v6  ;;  %2307 = vmatpush2.bf16.msra.mxu1 %v3401_v7  ;;  %v3446_v6 = vld [vmem:[%s4513_s2 + $0x10] ss:$24 sps:$4 sm:$0xff]  }
 0x145   : > { %2389 = vmatprep.subr.bf16.mxu0 %v3406_v8  ;;  %2502 = vmatprep.subr.bf16.mxu1 %v3409_v9  ;;  %v3449_v7 = vld [vmem:[%s4513_s2 + $0x310] ss:$24 sps:$4 sm:$0xff]   ;;  %v3454_v8 = vld [vmem:[%s4513_s2 + $0x2e4] ss:$24 sps:$4 sm:$0xff]  }
 0x146   : > { %v3457_v9 = vld [vmem:[%s4513_s2 + $0x5e4] ss:$24 sps:$4 sm:$0xff]  }
 0x147   : > { %2196 = vmatmul.mubr.bf16.vlgmr.msra.gmra.mxu0 %v3936_v3  ;;  %2309 = vmatmul.mubr.bf16.vlgmr.msra.gmra.mxu1 %v3938_v5 }
 0x148   : > { %2390 = vmatpush1.bf16.msra.mxu0 %v3404_v10  ;;  %2503 = vmatpush1.bf16.msra.mxu1 %v3407_v11  ;;  %v3452_v10 = vld [vmem:[%s4513_s2 + $0x2e0] ss:$24 sps:$4 sm:$0xff]  }
 0x149   : > { %2205 = vmatprep.mubr.bf16.mxu0 %v3962_v28  ;;  %2318 = vmatprep.mubr.bf16.mxu1 %v3964_v29  ;;  %v3455_v11 = vld [vmem:[%s4513_s2 + $0x5e0] ss:$24 sps:$4 sm:$0xff]  }
 0x14a   : > { %2391 = vmatprep.subr.bf16.mxu0 %v3412_v14  ;;  %2504 = vmatprep.subr.bf16.mxu1 %v3415_v15  ;;  %v3460_v14 = vld [vmem:[%s4513_s2 + $0x2b4] ss:$24 sps:$4 sm:$0xff]  }
 0x14b   : > { %v3463_v15 = vld [vmem:[%s4513_s2 + $0x5b4] ss:$24 sps:$4 sm:$0xff]  }
 0x14c   : > { %2392 = vmatpush1.bf16.msra.mxu0 %v3410_v18  ;;  %2505 = vmatpush1.bf16.msra.mxu1 %v3413_v19  ;;  %v3458_v18 = vld [vmem:[%s4513_s2 + $0x2b0] ss:$24 sps:$4 sm:$0xff]  }
 0x14d   : > { %2393 = vmatprep.subr.bf16.mxu0 %v3418_v20  ;;  %2506 = vmatprep.subr.bf16.mxu1 %v3421_v21  ;;  %v3461_v19 = vld [vmem:[%s4513_s2 + $0x5b0] ss:$24 sps:$4 sm:$0xff]   ;;  %v3466_v20 = vld [vmem:[%s4513_s2 + $0x284] ss:$24 sps:$4 sm:$0xff]  }
 0x14e   : > { %v3469_v21 = vld [vmem:[%s4513_s2 + $0x584] ss:$24 sps:$4 sm:$0xff]  }
 0x14f   : > { %2206 = vmatmul.mubr.bf16.gmra.mxu0 %v3972_v32  ;;  %2319 = vmatmul.mubr.bf16.gmra.mxu1 %v3974_v33 }
 0x150   : > { %2394 = vmatpush1.bf16.msra.mxu0 %v3416_v22  ;;  %2507 = vmatpush1.bf16.msra.mxu1 %v3419_v23  ;;  %v3464_v22 = vld [vmem:[%s4513_s2 + $0x280] ss:$24 sps:$4 sm:$0xff]  }
 0x151   : > { %2215 = vmatprep.mubr.bf16.mxu0 %v3998_v55  ;;  %2328 = vmatprep.mubr.bf16.mxu1 %v4000_v56  ;;  %v3467_v23 = vld [vmem:[%s4513_s2 + $0x580] ss:$24 sps:$4 sm:$0xff]  }
 0x152   : > { %2395 = vmatprep.subr.bf16.mxu0 %v3424_v26  ;;  %2508 = vmatprep.subr.bf16.mxu1 %v3427_v27  ;;  %v3472_v26 = vld [vmem:[%s4513_s2 + $0x254] ss:$24 sps:$4 sm:$0xff]  }
 0x153   : > { %v3475_v27 = vld [vmem:[%s4513_s2 + $0x554] ss:$24 sps:$4 sm:$0xff]  }
 0x154   : > { %2396 = vmatpush1.bf16.msra.mxu0 %v3422_v34  ;;  %2509 = vmatpush1.bf16.msra.mxu1 %v3425_v35  ;;  %v3470_v34 = vld [vmem:[%s4513_s2 + $0x250] ss:$24 sps:$4 sm:$0xff]  }
 0x155   : > { %2397 = vmatprep.subr.bf16.mxu0 %v3430_v4  ;;  %2510 = vmatprep.subr.bf16.mxu1 %v3433_v38  ;;  %v3473_v35 = vld [vmem:[%s4513_s2 + $0x550] ss:$24 sps:$4 sm:$0xff]   ;;  %v3478_v4 = vld [vmem:[%s4513_s2 + $0x224] ss:$24 sps:$4 sm:$0xff]  }
 0x156   : > { %v3481_v38 = vld [vmem:[%s4513_s2 + $0x524] ss:$24 sps:$4 sm:$0xff]  }
 0x157   : > { %2216 = vmatmul.mubr.bf16.gmra.mxu0 %v4008_v59  ;;  %2329 = vmatmul.mubr.bf16.gmra.mxu1 %v4010_v60 }
 0x158   : > { %2398 = vmatpush1.bf16.msra.mxu0 %v3428_v41  ;;  %2511 = vmatpush1.bf16.msra.mxu1 %v3431_v42  ;;  %v3476_v41 = vld [vmem:[%s4513_s2 + $0x220] ss:$24 sps:$4 sm:$0xff]  }
 0x159   : > { %2225 = vmatprep.mubr.bf16.mxu0 %v4034_v24  ;;  %2338 = vmatprep.mubr.bf16.mxu1 %v4036_v25  ;;  %v3479_v42 = vld [vmem:[%s4513_s2 + $0x520] ss:$24 sps:$4 sm:$0xff]  }
 0x15a   : > { %2399 = vmatprep.subr.bf16.mxu0 %v3436_v43  ;;  %2512 = vmatprep.subr.bf16.mxu1 %v3439_v44  ;;  %v3484_v43 = vld [vmem:[%s4513_s2 + $0x1f4] ss:$24 sps:$4 sm:$0xff]  }
 0x15b   : > { %v3487_v44 = vld [vmem:[%s4513_s2 + $0x4f4] ss:$24 sps:$4 sm:$0xff]  }
 0x15c   : > { %2400 = vmatpush1.bf16.msra.mxu0 %v3434_v45  ;;  %2513 = vmatpush1.bf16.msra.mxu1 %v3437_v46  ;;  %v3482_v45 = vld [vmem:[%s4513_s2 + $0x1f0] ss:$24 sps:$4 sm:$0xff]  }
 0x15d   : > { %2401 = vmatprep.subr.bf16.mxu0 %v3442_v47  ;;  %2514 = vmatprep.subr.bf16.mxu1 %v3445_v48  ;;  %v3485_v46 = vld [vmem:[%s4513_s2 + $0x4f0] ss:$24 sps:$4 sm:$0xff]   ;;  %v3490_v47 = vld [vmem:[%s4513_s2 + $0x1c4] ss:$24 sps:$4 sm:$0xff]  }
 0x15e   : > { %v3493_v48 = vld [vmem:[%s4513_s2 + $0x4c4] ss:$24 sps:$4 sm:$0xff]  }
 0x15f   : > { %2226 = vmatmul.mubr.bf16.gmra.mxu0 %v4044_v30  ;;  %2339 = vmatmul.mubr.bf16.gmra.mxu1 %v4046_v31 }
 0x160   : > { %2402 = vmatpush1.bf16.msra.mxu0 %v3440_v51  ;;  %2515 = vmatpush1.bf16.msra.mxu1 %v3443_v52  ;;  %v3488_v51 = vld [vmem:[%s4513_s2 + $0x1c0] ss:$24 sps:$4 sm:$0xff]  }
 0x161   : > { %2235 = vmatprep.mubr.bf16.mxu0 %v4070_v57  ;;  %2348 = vmatprep.mubr.bf16.mxu1 %v4072_v58  ;;  %v3491_v52 = vld [vmem:[%s4513_s2 + $0x4c0] ss:$24 sps:$4 sm:$0xff]  }
 0x162   : > { %2403 = vmatprep.subr.bf16.mxu0 %v3448_v61  ;;  %2516 = vmatprep.subr.bf16.mxu1 %v3451_v62  ;;  %v3496_v61 = vld [vmem:[%s4513_s2 + $0x194] ss:$24 sps:$4 sm:$0xff]  }
 0x163   : > { %v3499_v62 = vld [vmem:[%s4513_s2 + $0x494] ss:$24 sps:$4 sm:$0xff]  }
 0x164   : > { %2404 = vmatpush1.bf16.msra.mxu0 %v3446_v6  ;;  %2517 = vmatpush1.bf16.msra.mxu1 %v3449_v7  ;;  %v3494_v6 = vld [vmem:[%s4513_s2 + $0x190] ss:$24 sps:$4 sm:$0xff]  }
 0x165   : > { %2405 = vmatprep.subr.bf16.mxu0 %v3454_v8  ;;  %2518 = vmatprep.subr.bf16.mxu1 %v3457_v9  ;;  %v3497_v7 = vld [vmem:[%s4513_s2 + $0x490] ss:$24 sps:$4 sm:$0xff]  }
 0x167   : > { %2236 = vmatmul.mubr.bf16.gmra.mxu0 %v4080_v1  ;;  %2349 = vmatmul.mubr.bf16.gmra.mxu1 %v4082_v2 }
 0x168   : > { %2406 = vmatpush2.bf16.msra.mxu0 %v3452_v10  ;;  %2519 = vmatpush2.bf16.msra.mxu1 %v3455_v11 }
 0x169   : > { %2245 = vmatprep.mubr.bf16.mxu0 %v4106_v36  ;;  %2358 = vmatprep.mubr.bf16.mxu1 %v4108_v37 }
 0x16a   : > { %2407 = vmatprep.subr.bf16.mxu0 %v3460_v14  ;;  %2520 = vmatprep.subr.bf16.mxu1 %v3463_v15 }
 0x16c   : > { %2408 = vmatpush2.bf16.msra.mxu0 %v3458_v18  ;;  %2521 = vmatpush2.bf16.msra.mxu1 %v3461_v19 }
 0x16d   : > { %2409 = vmatprep.subr.bf16.mxu0 %v3466_v20  ;;  %2522 = vmatprep.subr.bf16.mxu1 %v3469_v21 }
 0x16f   : > { %2246 = vmatmul.mubr.bf16.gmra.mxu0 %v4116_v39  ;;  %2359 = vmatmul.mubr.bf16.gmra.mxu1 %v4118_v40 }
 0x170   : > { %2410 = vmatpush2.bf16.msra.mxu0 %v3464_v22  ;;  %2523 = vmatpush2.bf16.msra.mxu1 %v3467_v23 }
 0x171   : > { %2255 = vmatprep.mubr.bf16.mxu0 %v4142_v12  ;;  %2368 = vmatprep.mubr.bf16.mxu1 %v4144_v13 }
 0x172   : > { %2411 = vmatprep.subr.bf16.mxu0 %v3472_v26  ;;  %2524 = vmatprep.subr.bf16.mxu1 %v3475_v27 }
 0x174   : > { %2412 = vmatpush2.bf16.msra.mxu0 %v3470_v34  ;;  %2525 = vmatpush2.bf16.msra.mxu1 %v3473_v35 }
 0x175   : > { %2413 = vmatprep.subr.bf16.mxu0 %v3478_v4  ;;  %2526 = vmatprep.subr.bf16.mxu1 %v3481_v38 }
 0x177   : > { %2256 = vmatmul.mubr.bf16.gmra.mxu0 %v4152_v16  ;;  %2369 = vmatmul.mubr.bf16.gmra.mxu1 %v4154_v17 }
 0x178   : > { %2414 = vmatpush2.bf16.msra.mxu0 %v3476_v41  ;;  %2527 = vmatpush2.bf16.msra.mxu1 %v3479_v42 }
 0x179   : > { %2265 = vmatprep.mubr.bf16.mxu0 %v4178_v49  ;;  %2378 = vmatprep.mubr.bf16.mxu1 %v4180_v50 }
 0x17a   : > { %2415 = vmatprep.subr.bf16.mxu0 %v3484_v43  ;;  %2528 = vmatprep.subr.bf16.mxu1 %v3487_v44 }
 0x17c   : > { %2416 = vmatpush2.bf16.msra.mxu0 %v3482_v45  ;;  %2529 = vmatpush2.bf16.msra.mxu1 %v3485_v46 }
 0x17d   : > { %2417 = vmatprep.subr.bf16.mxu0 %v3490_v47  ;;  %2530 = vmatprep.subr.bf16.mxu1 %v3493_v48 }
 0x17f   : > { %2266 = vmatmul.mubr.bf16.gmra.mxu0 %v4188_v53  ;;  %2379 = vmatmul.mubr.bf16.gmra.mxu1 %v4190_v54 }
 0x180   : > { %2418 = vmatpush2.bf16.msra.mxu0 %v3488_v51  ;;  %2531 = vmatpush2.bf16.msra.mxu1 %v3491_v52 }
 0x181   : > { %2421 = vmatprep.mubr.bf16.mxu0 %v3926_v63  ;;  %2534 = vmatprep.mubr.bf16.mxu1 %v3928_v0 }
 0x182   : > { %2419 = vmatprep.subr.bf16.mxu0 %v3496_v61  ;;  %2532 = vmatprep.subr.bf16.mxu1 %v3499_v62 }
 0x184   : > { %2420 = vmatpush2.bf16.msra.mxu0 %v3494_v6  ;;  %2533 = vmatpush2.bf16.msra.mxu1 %v3497_v7 }
 0x187   : > { %2422 = vmatmul.mubr.bf16.vlgmr.msra.gmra.mxu0 %v3936_v3  ;;  %2535 = vmatmul.mubr.bf16.vlgmr.msra.gmra.mxu1 %v3938_v5 }
 0x188   : > { %2431 = vmatprep.mubr.bf16.mxu0 %v3962_v28  ;;  %2544 = vmatprep.mubr.bf16.mxu1 %v3964_v29 }
 0x18f   : > { %2432 = vmatmul.mubr.bf16.gmra.mxu0 %v3972_v32  ;;  %2545 = vmatmul.mubr.bf16.gmra.mxu1 %v3974_v33 }
 0x190   : > { %2441 = vmatprep.mubr.bf16.mxu0 %v3998_v55  ;;  %2554 = vmatprep.mubr.bf16.mxu1 %v4000_v56 }
 0x197   : > { %2442 = vmatmul.mubr.bf16.gmra.mxu0 %v4008_v59  ;;  %2555 = vmatmul.mubr.bf16.gmra.mxu1 %v4010_v60 }
 0x198   : > { %2451 = vmatprep.mubr.bf16.mxu0 %v4034_v24  ;;  %2564 = vmatprep.mubr.bf16.mxu1 %v4036_v25 }
 0x19f   : > { %2452 = vmatmul.mubr.bf16.gmra.mxu0 %v4044_v30  ;;  %2565 = vmatmul.mubr.bf16.gmra.mxu1 %v4046_v31 }
 0x1a0   : > { %2461 = vmatprep.mubr.bf16.mxu0 %v4070_v57  ;;  %2574 = vmatprep.mubr.bf16.mxu1 %v4072_v58 }
 0x1a7   : > { %2462 = vmatmul.mubr.bf16.gmra.mxu0 %v4080_v1  ;;  %2575 = vmatmul.mubr.bf16.gmra.mxu1 %v4082_v2 }
 0x1a8   : > { %2471 = vmatprep.mubr.bf16.mxu0 %v4106_v36  ;;  %2584 = vmatprep.mubr.bf16.mxu1 %v4108_v37 }
 0x1af   : > { %2472 = vmatmul.mubr.bf16.gmra.mxu0 %v4116_v39  ;;  %2585 = vmatmul.mubr.bf16.gmra.mxu1 %v4118_v40 }
 0x1b0   : > { %2481 = vmatprep.mubr.bf16.mxu0 %v4142_v12  ;;  %2594 = vmatprep.mubr.bf16.mxu1 %v4144_v13 }
 0x1b7   : > { %2482 = vmatmul.mubr.bf16.gmra.mxu0 %v4152_v16  ;;  %2595 = vmatmul.mubr.bf16.gmra.mxu1 %v4154_v17 }
 0x1b8   : > { %2491 = vmatprep.mubr.bf16.mxu0 %v4178_v49  ;;  %2604 = vmatprep.mubr.bf16.mxu1 %v4180_v50 }
 0x1bf   : > { %2492 = vmatmul.mubr.bf16.gmra.mxu0 %v4188_v53  ;;  %2605 = vmatmul.mubr.bf16.gmra.mxu1 %v4190_v54 }
 0x1c7   : > { %v1971_v63 = vpop.f32.mrf.mxu0  ;;  %v2084_v0 = vpop.f32.mrf.mxu1 }
 0x1c8   : > { %v2085_v3 = vadd.f32 %v2084_v0, %v1971_v63 }
 0x1c9   : > { %v1973_v5 = vpop.f32.mrf.mxu0  ;;  %v2086_v28 = vpop.f32.mrf.mxu1 }
 0x1ca   : > { %v2087_v29 = vadd.f32 %v2086_v28, %v1973_v5 }
 0x1cb   : > { %v1975_v32 = vpop.f32.mrf.mxu0  ;;  %v2088_v33 = vpop.f32.mrf.mxu1 }
 0x1cc   : > { %v2089_v55 = vadd.f32 %v2088_v33, %v1975_v32 }
 0x1cd   : > { %v1977_v56 = vpop.f32.mrf.mxu0  ;;  %v2090_v59 = vpop.f32.mrf.mxu1 }
 0x1ce   : > { %v2616_v60 = vadd.f32 %v2089_v55, %v2085_v3  ;;  %v2091_v24 = vadd.f32 %v2090_v59, %v1977_v56 }
 0x1cf   : > { %v1981_v25 = vpop.f32.mrf.mxu0  ;;  %v2094_v30 = vpop.f32.mrf.mxu1 }
 0x1d0   : > { %v2637_v31 = vadd.f32 %v2091_v24, %v2087_v29  ;;  %v2095_v57 = vadd.f32 %v2094_v30, %v1981_v25 }
 0x1d1   : > { %v1983_v58 = vpop.f32.mrf.mxu0  ;;  %v2096_v1 = vpop.f32.mrf.mxu1 }
 0x1d2   : > { %v2617_v2 = vadd.f32 %v2616_v60, %v2095_v57  ;;  %v2097_v36 = vadd.f32 %v2096_v1, %v1983_v58 }
 0x1d3   : > { %v1985_v37 = vpop.f32.mrf.mxu0  ;;  %v2098_v39 = vpop.f32.mrf.mxu1 }
 0x1d4   : > { %v2638_v40 = vadd.f32 %v2637_v31, %v2097_v36  ;;  %v2099_v12 = vadd.f32 %v2098_v39, %v1985_v37 }
 0x1d5   : > { %v1987_v13 = vpop.f32.mrf.mxu0  ;;  %v2100_v16 = vpop.f32.mrf.mxu1 }
 0x1d6   : > { %v2618_v17 = vadd.f32 %v2617_v2, %v2099_v12  ;;  %v2101_v49 = vadd.f32 %v2100_v16, %v1987_v13 }
 0x1d7   : > { %v1991_v50 = vpop.f32.mrf.mxu0  ;;  %v2104_v53 = vpop.f32.mrf.mxu1 }
 0x1d8   : > { %v2639_v54 = vadd.f32 %v2638_v40, %v2101_v49  ;;  %v2105_v8 = vadd.f32 %v2104_v53, %v1991_v50 }
 0x1d9   : > { %v1993_v9 = vpop.f32.mrf.mxu0  ;;  %v2106_v10 = vpop.f32.mrf.mxu1 }
 0x1da   : > { %v2619_v11 = vadd.f32 %v2618_v17, %v2105_v8  ;;  %v2107_v14 = vadd.f32 %v2106_v10, %v1993_v9 }
 0x1db   : > { %v1995_v15 = vpop.f32.mrf.mxu0  ;;  %v2108_v18 = vpop.f32.mrf.mxu1 }
 0x1dc   : > { %v2640_v19 = vadd.f32 %v2639_v54, %v2107_v14  ;;  %v2109_v20 = vadd.f32 %v2108_v18, %v1995_v15 }
 0x1dd   : > { %v1997_v21 = vpop.f32.mrf.mxu0  ;;  %v2110_v22 = vpop.f32.mrf.mxu1 }
 0x1de   : > { %v2620_v23 = vadd.f32 %v2619_v11, %v2109_v20  ;;  %v2111_v26 = vadd.f32 %v2110_v22, %v1997_v21 }
 0x1df   : > { %v2001_v27 = vpop.f32.mrf.mxu0  ;;  %v2114_v34 = vpop.f32.mrf.mxu1 }
 0x1e0   : > { %v2641_v35 = vadd.f32 %v2640_v19, %v2111_v26  ;;  %v2115_v4 = vadd.f32 %v2114_v34, %v2001_v27 }
 0x1e1   : > { %v2003_v38 = vpop.f32.mrf.mxu0  ;;  %v2116_v41 = vpop.f32.mrf.mxu1 }
 0x1e2   : > { %v2621_v42 = vadd.f32 %v2620_v23, %v2115_v4  ;;  %v2117_v43 = vadd.f32 %v2116_v41, %v2003_v38 }
 0x1e3   : > { %v2005_v44 = vpop.f32.mrf.mxu0  ;;  %v2118_v45 = vpop.f32.mrf.mxu1 }
 0x1e4   : > { %v2642_v46 = vadd.f32 %v2641_v35, %v2117_v43  ;;  %v2119_v47 = vadd.f32 %v2118_v45, %v2005_v44 }
 0x1e5   : > { %v2007_v48 = vpop.f32.mrf.mxu0  ;;  %v2120_v51 = vpop.f32.mrf.mxu1 }
 0x1e6   : > { %v2622_v52 = vadd.f32 %v2621_v42, %v2119_v47  ;;  %v2121_v61 = vadd.f32 %v2120_v51, %v2007_v48 }
 0x1e7   : > { %v2011_v62 = vpop.f32.mrf.mxu0  ;;  %v2124_v6 = vpop.f32.mrf.mxu1 }
 0x1e8   : > { %v2643_v7 = vadd.f32 %v2642_v46, %v2121_v61  ;;  %v2125_v63 = vadd.f32 %v2124_v6, %v2011_v62 }
 0x1e9   : > { %v2013_v0 = vpop.f32.mrf.mxu0  ;;  %v2126_v3 = vpop.f32.mrf.mxu1 }
 0x1ea   : > { %v2623_v5 = vadd.f32 %v2622_v52, %v2125_v63  ;;  %v2127_v28 = vadd.f32 %v2126_v3, %v2013_v0 }
 0x1eb   : > { %v2015_v29 = vpop.f32.mrf.mxu0  ;;  %v2128_v32 = vpop.f32.mrf.mxu1 }
 0x1ec   : > { %v2644_v33 = vadd.f32 %v2643_v7, %v2127_v28  ;;  %v2129_v55 = vadd.f32 %v2128_v32, %v2015_v29 }
 0x1ed   : > { %v2017_v56 = vpop.f32.mrf.mxu0  ;;  %v2130_v59 = vpop.f32.mrf.mxu1 }
 0x1ee   : > { %v2624_v60 = vadd.f32 %v2623_v5, %v2129_v55  ;;  %v2131_v24 = vadd.f32 %v2130_v59, %v2017_v56 }
 0x1ef   : > { %v2021_v25 = vpop.f32.mrf.mxu0  ;;  %v2134_v30 = vpop.f32.mrf.mxu1 }
 0x1f0   : > { %v2645_v31 = vadd.f32 %v2644_v33, %v2131_v24  ;;  %v2135_v57 = vadd.f32 %v2134_v30, %v2021_v25 }
 0x1f1   : > { %v2023_v58 = vpop.f32.mrf.mxu0  ;;  %v2136_v1 = vpop.f32.mrf.mxu1 }
 0x1f2   : > { %v2625_v2 = vadd.f32 %v2624_v60, %v2135_v57  ;;  %v2137_v36 = vadd.f32 %v2136_v1, %v2023_v58 }
 0x1f3   : > { %v2025_v37 = vpop.f32.mrf.mxu0  ;;  %v2138_v39 = vpop.f32.mrf.mxu1 }
 0x1f4   : > { %v2646_v40 = vadd.f32 %v2645_v31, %v2137_v36  ;;  %v2139_v12 = vadd.f32 %v2138_v39, %v2025_v37 }
 0x1f5   : > { %v2027_v13 = vpop.f32.mrf.mxu0  ;;  %v2140_v16 = vpop.f32.mrf.mxu1 }
 0x1f6   : > { %v2626_v17 = vadd.f32 %v2625_v2, %v2139_v12  ;;  %v2141_v49 = vadd.f32 %v2140_v16, %v2027_v13 }
 0x1f7   : > { %v2031_v50 = vpop.f32.mrf.mxu0  ;;  %v2144_v53 = vpop.f32.mrf.mxu1 }
 0x1f8   : > { %v2647_v54 = vadd.f32 %v2646_v40, %v2141_v49  ;;  %v2145_v8 = vadd.f32 %v2144_v53, %v2031_v50 }
 0x1f9   : > { %v2033_v9 = vpop.f32.mrf.mxu0  ;;  %v2146_v10 = vpop.f32.mrf.mxu1 }
 0x1fa   : > { %v2627_v11 = vadd.f32 %v2626_v17, %v2145_v8  ;;  %v2147_v14 = vadd.f32 %v2146_v10, %v2033_v9 }
 0x1fb   : > { %v2035_v15 = vpop.f32.mrf.mxu0  ;;  %v2148_v18 = vpop.f32.mrf.mxu1 }
 0x1fc   : > { %v2648_v19 = vadd.f32 %v2647_v54, %v2147_v14  ;;  %v2149_v20 = vadd.f32 %v2148_v18, %v2035_v15 }
 0x1fd   : > { %v2037_v21 = vpop.f32.mrf.mxu0  ;;  %v2150_v22 = vpop.f32.mrf.mxu1 }
 0x1fe   : > { %v2628_v23 = vadd.f32 %v2627_v11, %v2149_v20  ;;  %v2151_v26 = vadd.f32 %v2150_v22, %v2037_v21 }
 0x1ff   : > { %v2041_v27 = vpop.f32.mrf.mxu0  ;;  %v2154_v34 = vpop.f32.mrf.mxu1 }
 0x200   : > { %v2649_v35 = vadd.f32 %v2648_v19, %v2151_v26  ;;  %v2155_v4 = vadd.f32 %v2154_v34, %v2041_v27 }
 0x201   : > { %v2043_v38 = vpop.f32.mrf.mxu0  ;;  %v2156_v41 = vpop.f32.mrf.mxu1 }
 0x202   : > { %v2629_v42 = vadd.f32 %v2628_v23, %v2155_v4  ;;  %v2157_v43 = vadd.f32 %v2156_v41, %v2043_v38 }
 0x203   : > { %v2045_v44 = vpop.f32.mrf.mxu0  ;;  %v2158_v45 = vpop.f32.mrf.mxu1 }
 0x204   : > { %v2650_v46 = vadd.f32 %v2649_v35, %v2157_v43  ;;  %v2159_v47 = vadd.f32 %v2158_v45, %v2045_v44 }
 0x205   : > { %v2047_v48 = vpop.f32.mrf.mxu0  ;;  %v2160_v51 = vpop.f32.mrf.mxu1 }
 0x206   : > { %v2630_v52 = vadd.f32 %v2629_v42, %v2159_v47  ;;  %v2161_v61 = vadd.f32 %v2160_v51, %v2047_v48 }
 0x207   : > { %v2197_v62 = vpop.f32.mrf.mxu0  ;;  %v2310_v6 = vpop.f32.mrf.mxu1 }
 0x208   : > { %v2631_v7 = vrot.slane %v2630_v52, 4  ;;  %v2651_v63 = vadd.f32 %v2650_v46, %v2161_v61  ;;  %v2311_v0 = vadd.f32 %v2310_v6, %v2197_v62 }
 0x209   : > { %v2199_v3 = vpop.f32.mrf.mxu0  ;;  %v2312_v5 = vpop.f32.mrf.mxu1 }
 0x20a   : > { %v2632_v28 = vadd.f32 %v2631_v7, %v2630_v52  ;;  %v2652_v29 = vrot.slane %v2651_v63, 4  ;;  %v2313_v32 = vadd.f32 %v2312_v5, %v2199_v3 }
 0x20b   : > { %v2201_v33 = vpop.f32.mrf.mxu0  ;;  %v2314_v55 = vpop.f32.mrf.mxu1 }
 0x20c   : > { %v2633_v56 = vrot.slane %v2632_v28, 2  ;;  %v2653_v59 = vadd.f32 %v2652_v29, %v2651_v63  ;;  %v2315_v60 = vadd.f32 %v2314_v55, %v2201_v33 }
 0x20d   : > { %v2203_v24 = vpop.f32.mrf.mxu0  ;;  %v2316_v25 = vpop.f32.mrf.mxu1 }
 0x20e   : > { %v2634_v30 = vadd.f32 %v2633_v56, %v2632_v28  ;;  %v2654_v31 = vrot.slane %v2653_v59, 2  ;;  %v2658_v57 = vadd.f32 %v2315_v60, %v2311_v0  ;;  %v2317_v58 = vadd.f32 %v2316_v25, %v2203_v24 }
 0x20f   : > { %v2207_v1 = vpop.f32.mrf.mxu0  ;;  %v2320_v2 = vpop.f32.mrf.mxu1 }
 0x210   : > { %v2635_v36 = vrot.slane %v2634_v30, 1  ;;  %v2655_v37 = vadd.f32 %v2654_v31, %v2653_v59  ;;  %v2679_v39 = vadd.f32 %v2317_v58, %v2313_v32  ;;  %v2321_v40 = vadd.f32 %v2320_v2, %v2207_v1 }
 0x211   : > { %v2209_v12 = vpop.f32.mrf.mxu0  ;;  %v2322_v13 = vpop.f32.mrf.mxu1 }
 0x212   : > { %v2656_v16 = vrot.slane %v2655_v37, 1  ;;  %v2659_v17 = vadd.f32 %v2658_v57, %v2321_v40  ;;  %v2323_v49 = vadd.f32 %v2322_v13, %v2209_v12  ;;  %v4464_v54 = vadd.f32 %v2635_v36, %v2634_v30 }
 0x213   : > { %v2211_v50 = vpop.f32.mrf.mxu0  ;;  %v2324_v53 = vpop.f32.mrf.mxu1 }
 0x214   : > { %v4466_v8 = vadd.f32 %v2656_v16, %v2655_v37  ;;  %v2680_v9 = vadd.f32 %v2679_v39, %v2323_v49  ;;  %v2325_v10 = vadd.f32 %v2324_v53, %v2211_v50 }
 0x215   : > { %v2213_v11 = vpop.f32.mrf.mxu0  ;;  %v2326_v14 = vpop.f32.mrf.mxu1 }
 0x216   : > { %v2748_v15 = vcombine.low %v4464_v54, %v4466_v8  ;;  %v2660_v18 = vadd.f32 %v2659_v17, %v2325_v10  ;;  %v2327_v19 = vadd.f32 %v2326_v14, %v2213_v11 }
 0x217   : > { %v2217_v20 = vpop.f32.mrf.mxu0  ;;  %v2330_v21 = vpop.f32.mrf.mxu1 }
 0x218   : > { %v2681_v22 = vadd.f32 %v2680_v9, %v2327_v19  ;;  %v2331_v23 = vadd.f32 %v2330_v21, %v2217_v20 }
 0x219   : > { %v2219_v26 = vpop.f32.mrf.mxu0  ;;  %v2332_v27 = vpop.f32.mrf.mxu1 }
 0x21a   : > { %v2661_v34 = vadd.f32 %v2660_v18, %v2331_v23  ;;  %v2333_v35 = vadd.f32 %v2332_v27, %v2219_v26 }
 0x21b   : > { %v2221_v4 = vpop.f32.mrf.mxu0  ;;  %v2334_v38 = vpop.f32.mrf.mxu1 }
 0x21c   : > { %v2682_v41 = vadd.f32 %v2681_v22, %v2333_v35  ;;  %v2335_v42 = vadd.f32 %v2334_v38, %v2221_v4 }
 0x21d   : > { %v2223_v43 = vpop.f32.mrf.mxu0  ;;  %v2336_v44 = vpop.f32.mrf.mxu1 }
 0x21e   : > { %v2662_v45 = vadd.f32 %v2661_v34, %v2335_v42  ;;  %v2337_v46 = vadd.f32 %v2336_v44, %v2223_v43 }
 0x21f   : > { %v2227_v47 = vpop.f32.mrf.mxu0  ;;  %v2340_v48 = vpop.f32.mrf.mxu1 }
 0x220   : > { %v2683_v51 = vadd.f32 %v2682_v41, %v2337_v46  ;;  %v2341_v52 = vadd.f32 %v2340_v48, %v2227_v47 }
 0x221   : > { %v2229_v61 = vpop.f32.mrf.mxu0  ;;  %v2342_v62 = vpop.f32.mrf.mxu1 }
 0x222   : > { %v2663_v6 = vadd.f32 %v2662_v45, %v2341_v52  ;;  %v2343_v7 = vadd.f32 %v2342_v62, %v2229_v61 }
 0x223   : > { %v2231_v63 = vpop.f32.mrf.mxu0  ;;  %v2344_v0 = vpop.f32.mrf.mxu1 }
 0x224   : > { %v2684_v3 = vadd.f32 %v2683_v51, %v2343_v7  ;;  %v2345_v5 = vadd.f32 %v2344_v0, %v2231_v63 }
 0x225   : > { %v2233_v28 = vpop.f32.mrf.mxu0  ;;  %v2346_v29 = vpop.f32.mrf.mxu1 }
 0x226   : > { %v2664_v32 = vadd.f32 %v2663_v6, %v2345_v5  ;;  %v2347_v33 = vadd.f32 %v2346_v29, %v2233_v28 }
 0x227   : > { %v2237_v55 = vpop.f32.mrf.mxu0  ;;  %v2350_v56 = vpop.f32.mrf.mxu1 }
 0x228   : > { %v2685_v59 = vadd.f32 %v2684_v3, %v2347_v33  ;;  %v2351_v60 = vadd.f32 %v2350_v56, %v2237_v55 }
 0x229   : > { %v2239_v24 = vpop.f32.mrf.mxu0  ;;  %v2352_v25 = vpop.f32.mrf.mxu1 }
 0x22a   : > { %v2665_v30 = vadd.f32 %v2664_v32, %v2351_v60  ;;  %v2353_v31 = vadd.f32 %v2352_v25, %v2239_v24 }
 0x22b   : > { %v2241_v57 = vpop.f32.mrf.mxu0  ;;  %v2354_v58 = vpop.f32.mrf.mxu1 }
 0x22c   : > { %v2686_v1 = vadd.f32 %v2685_v59, %v2353_v31  ;;  %v2355_v2 = vadd.f32 %v2354_v58, %v2241_v57 }
 0x22d   : > { %v2243_v36 = vpop.f32.mrf.mxu0  ;;  %v2356_v37 = vpop.f32.mrf.mxu1 }
 0x22e   : > { %v2666_v39 = vadd.f32 %v2665_v30, %v2355_v2  ;;  %v2357_v40 = vadd.f32 %v2356_v37, %v2243_v36  ;;  %v3542_v37 = vmov 1966171168  }
 0x22f   : > { %v2247_v12 = vpop.f32.mrf.mxu0  ;;  %v2360_v13 = vpop.f32.mrf.mxu1 }
 0x230   : > { %v2687_v16 = vadd.f32 %v2686_v1, %v2357_v40  ;;  %v2361_v17 = vadd.f32 %v2360_v13, %v2247_v12  ;;  %v2754_v40 = vlaneseq }
 0x231   : > { %v2249_v49 = vpop.f32.mrf.mxu0  ;;  %v2362_v50 = vpop.f32.mrf.mxu1 }
 0x232   : > { %v2667_v53 = vadd.f32 %v2666_v39, %v2361_v17  ;;  %v2363_v9 = vadd.f32 %v2362_v50, %v2249_v49  ;;  %v2752_v39 = vunpack.c.l.s4 %v3542_v37  ;;  %vm2792_vm1 = vcmp.lt.s32.totalorder %v2754_v40, 768 }
 0x233   : > { %v2251_v10 = vpop.f32.mrf.mxu0  ;;  %v2364_v11 = vpop.f32.mrf.mxu1 }
 0x234   : > { %v2688_v14 = vadd.f32 %v2687_v16, %v2363_v9  ;;  %v2365_v18 = vadd.f32 %v2364_v11, %v2251_v10  ;;  %v2753_v10 = vunpack.c.0.s8 %v2752_v39  ;;  %v2755_v11 = vshrl.u32 %v2754_v40, 7 }
 0x235   : > { %v2253_v19 = vpop.f32.mrf.mxu0  ;;  %v2366_v20 = vpop.f32.mrf.mxu1 }
 0x236   : > { %v2668_v21 = vadd.f32 %v2667_v53, %v2365_v18  ;;  %v2367_v22 = vadd.f32 %v2366_v20, %v2253_v19 }
 0x237   : > { %v2257_v23 = vpop.f32.mrf.mxu0  ;;  %v2370_v26 = vpop.f32.mrf.mxu1 }
 0x238   : > { %v2689_v27 = vadd.f32 %v2688_v14, %v2367_v22  ;;  %v2371_v34 = vadd.f32 %v2370_v26, %v2257_v23  ;;  %v4471_v26 = vsub.s32 %v2753_v10, %v2755_v11 }
 0x239   : > { %v2259_v35 = vpop.f32.mrf.mxu0  ;;  %v2372_v4 = vpop.f32.mrf.mxu1 }
 0x23a   : > { %v2669_v38 = vadd.f32 %v2668_v21, %v2371_v34  ;;  %v2373_v41 = vadd.f32 %v2372_v4, %v2259_v35 }
 0x23b   : > { %v2261_v42 = vpop.f32.mrf.mxu0  ;;  %v2374_v43 = vpop.f32.mrf.mxu1 }
 0x23c   : > { %v2690_v44 = vadd.f32 %v2689_v27, %v2373_v41  ;;  %v2375_v45 = vadd.f32 %v2374_v43, %v2261_v42  ;;  %v4477_v43 = vrot.slane %v2748_v15, %v4471_v26 }
 0x23d   : > { %v2263_v46 = vpop.f32.mrf.mxu0  ;;  %v2376_v47 = vpop.f32.mrf.mxu1 }
 0x23e   : > { %v2670_v48 = vadd.f32 %v2669_v38, %v2375_v45  ;;  %v2377_v51 = vadd.f32 %v2376_v47, %v2263_v46 }
 0x23f   : > { %v2267_v52 = vpop.f32.mrf.mxu0  ;;  %v2380_v61 = vpop.f32.mrf.mxu1 }
 0x240   : > { %v2691_v62 = vadd.f32 %v2690_v44, %v2377_v51  ;;  %v2381_v6 = vadd.f32 %v2380_v61, %v2267_v52 }
 0x241   : > { %v2269_v7 = vpop.f32.mrf.mxu0  ;;  %v2382_v63 = vpop.f32.mrf.mxu1 }
 0x242   : > { %v2671_v0 = vadd.f32 %v2670_v48, %v2381_v6  ;;  %v2383_v3 = vadd.f32 %v2382_v63, %v2269_v7 }
 0x243   : > { %v2271_v5 = vpop.f32.mrf.mxu0  ;;  %v2384_v28 = vpop.f32.mrf.mxu1 }
 0x244   : > { %v2692_v29 = vadd.f32 %v2691_v62, %v2383_v3  ;;  %v2385_v32 = vadd.f32 %v2384_v28, %v2271_v5 }
 0x245   : > { %v2273_v33 = vpop.f32.mrf.mxu0  ;;  %v2386_v55 = vpop.f32.mrf.mxu1 }
 0x246   : > { %v2672_v56 = vadd.f32 %v2671_v0, %v2385_v32  ;;  %v2387_v59 = vadd.f32 %v2386_v55, %v2273_v33 }
 0x247   : > { %v2423_v60 = vpop.f32.mrf.mxu0  ;;  %v2536_v24 = vpop.f32.mrf.mxu1 }
 0x248   : > { %v2673_v25 = vrot.slane %v2672_v56, 4  ;;  %v2693_v30 = vadd.f32 %v2692_v29, %v2387_v59  ;;  %v2537_v29 = vadd.f32 %v2536_v24, %v2423_v60 }
 0x249   : > { %v2425_v31 = vpop.f32.mrf.mxu0  ;;  %v2538_v57 = vpop.f32.mrf.mxu1 }
 0x24a   : > { %v2674_v58 = vadd.f32 %v2673_v25, %v2672_v56  ;;  %v2694_v1 = vrot.slane %v2693_v30, 4  ;;  %v2539_v59 = vadd.f32 %v2538_v57, %v2425_v31 }
 0x24b   : > { %v2427_v2 = vpop.f32.mrf.mxu0  ;;  %v2540_v36 = vpop.f32.mrf.mxu1 }
 0x24c   : > { %v2675_v12 = vrot.slane %v2674_v58, 2  ;;  %v2695_v13 = vadd.f32 %v2694_v1, %v2693_v30  ;;  %v2541_v3 = vadd.f32 %v2540_v36, %v2427_v2 }
 0x24d   : > { %v2429_v16 = vpop.f32.mrf.mxu0  ;;  %v2542_v17 = vpop.f32.mrf.mxu1 }
 0x24e   : > { %v2676_v49 = vadd.f32 %v2675_v12, %v2674_v58  ;;  %v2696_v50 = vrot.slane %v2695_v13, 2  ;;  %v2543_v32 = vadd.f32 %v2542_v17, %v2429_v16  ;;  %v2700_v25 = vadd.f32 %v2541_v3, %v2537_v29 }
 0x24f   : > { %v2433_v53 = vpop.f32.mrf.mxu0  ;;  %v2546_v9 = vpop.f32.mrf.mxu1 }
 0x250   : > { %v2677_v14 = vrot.slane %v2676_v49, 1  ;;  %v2697_v18 = vadd.f32 %v2696_v50, %v2695_v13  ;;  %v2547_v33 = vadd.f32 %v2546_v9, %v2433_v53  ;;  %v2721_v39 = vadd.f32 %v2543_v32, %v2539_v59 }
 0x251   : > { %v2435_v19 = vpop.f32.mrf.mxu0  ;;  %v2548_v20 = vpop.f32.mrf.mxu1 }
 0x252   : > { %v2698_v21 = vrot.slane %v2697_v18, 1  ;;  %v2678_v27 = vadd.f32 %v2677_v14, %v2676_v49  ;;  %v2549_v30 = vadd.f32 %v2548_v20, %v2435_v19  ;;  %v2701_v12 = vadd.f32 %v2700_v25, %v2547_v33 }
 0x253   : > { %v2437_v22 = vpop.f32.mrf.mxu0  ;;  %v2550_v23 = vpop.f32.mrf.mxu1 }
 0x254   : > { %v2699_v34 = vadd.f32 %v2698_v21, %v2697_v18  ;;  %v2551_v58 = vadd.f32 %v2550_v23, %v2437_v22  ;;  %v2722_v2 = vadd.f32 %v2721_v39, %v2549_v30 }
 0x255   : > { %v2439_v35 = vpop.f32.mrf.mxu0  ;;  %v2552_v4 = vpop.f32.mrf.mxu1 }
 0x256   : > { %v2749_v38 = vcombine.low %v2678_v27, %v2699_v34  ;;  %v2553_v13 = vadd.f32 %v2552_v4, %v2439_v35  ;;  %v2702_v36 = vadd.f32 %v2701_v12, %v2551_v58 }
 0x257   : > { %v2443_v41 = vpop.f32.mrf.mxu0  ;;  %v2556_v42 = vpop.f32.mrf.mxu1 }
 0x258   : > { %v4480_v44 = vrot.slane %v2749_v38, %v4471_v26  ;;  %v2557_v49 = vadd.f32 %v2556_v42, %v2443_v41  ;;  %v2723_v17 = vadd.f32 %v2722_v2, %v2553_v13 }
 0x259   : > { %v2445_v45 = vpop.f32.mrf.mxu0  ;;  %v2558_v46 = vpop.f32.mrf.mxu1 }
 0x25a   : > { %v2772_v47 = vcombine.low %v4477_v43, %v4480_v44  ;;  %v2559_v11 = vadd.f32 %v2558_v46, %v2445_v45  ;;  %v2703_v53 = vadd.f32 %v2702_v36, %v2557_v49 }
 0x25b   : > { %v2447_v48 = vpop.f32.mrf.mxu0  ;;  %v2560_v51 = vpop.f32.mrf.mxu1 }
 0x25c   : > { %v2561_v60 = vadd.f32 %v2560_v51, %v2447_v48  ;;  %v2724_v18 = vadd.f32 %v2723_v17, %v2559_v11 }
 0x25d   : > { %v2449_v52 = vpop.f32.mrf.mxu0  ;;  %v2562_v61 = vpop.f32.mrf.mxu1 }
 0x25e   : > { %v2563_v31 = vadd.f32 %v2562_v61, %v2449_v52  ;;  %v2704_v19 = vadd.f32 %v2703_v53, %v2561_v60 }
 0x25f   : > { %v2453_v62 = vpop.f32.mrf.mxu0  ;;  %v2566_v6 = vpop.f32.mrf.mxu1 }
 0x260   : > { %v2567_v57 = vadd.f32 %v2566_v6, %v2453_v62  ;;  %v2725_v27 = vadd.f32 %v2724_v18, %v2563_v31 }
 0x261   : > { %v2455_v7 = vpop.f32.mrf.mxu0  ;;  %v2568_v63 = vpop.f32.mrf.mxu1 }
 0x262   : > { %v2569_v20 = vadd.f32 %v2568_v63, %v2455_v7  ;;  %v2705_v34 = vadd.f32 %v2704_v19, %v2567_v57 }
 0x263   : > { %v2457_v0 = vpop.f32.mrf.mxu0  ;;  %v2570_v54 = vpop.f32.mrf.mxu1 }
 0x264   : > { %v2571_v21 = vadd.f32 %v2570_v54, %v2457_v0  ;;  %v2726_v42 = vadd.f32 %v2725_v27, %v2569_v20 }
 0x265   : > { %v2459_v8 = vpop.f32.mrf.mxu0  ;;  %v2572_v15 = vpop.f32.mrf.mxu1 }
 0x266   : > { %v2573_v35 = vadd.f32 %v2572_v15, %v2459_v8  ;;  %v2706_v45 = vadd.f32 %v2705_v34, %v2571_v21 }
 0x267   : > { %v2463_v5 = vpop.f32.mrf.mxu0  ;;  %v2576_v28 = vpop.f32.mrf.mxu1 }
 0x268   : > { %v2577_v4 = vadd.f32 %v2576_v28, %v2463_v5  ;;  %v2727_v61 = vadd.f32 %v2726_v42, %v2573_v35 }
 0x269   : > { %v2465_v55 = vpop.f32.mrf.mxu0  ;;  %v2578_v56 = vpop.f32.mrf.mxu1 }
 0x26a   : > { %v2579_v46 = vadd.f32 %v2578_v56, %v2465_v55  ;;  %v2707_v62 = vadd.f32 %v2706_v45, %v2577_v4 }
 0x26b   : > { %v2467_v1 = vpop.f32.mrf.mxu0  ;;  %v2580_v37 = vpop.f32.mrf.mxu1 }
 0x26c   : > { %v2581_v48 = vadd.f32 %v2580_v37, %v2467_v1  ;;  %v2728_v0 = vadd.f32 %v2727_v61, %v2579_v46 }
 0x26d   : > { %v2469_v50 = vpop.f32.mrf.mxu0  ;;  %v2582_v10 = vpop.f32.mrf.mxu1 }
 0x26e   : > { %v2583_v6 = vadd.f32 %v2582_v10, %v2469_v50  ;;  %v2708_v54 = vadd.f32 %v2707_v62, %v2581_v48  ;;  %v2615_v62 = vld [vmem:[%s3604_s29] sm:$0x3f] }
 0x26f   : > { %v2473_v24 = vpop.f32.mrf.mxu0  ;;  %v2586_v16 = vpop.f32.mrf.mxu1 }
 0x270   : > { %v2587_v3 = vadd.f32 %v2586_v16, %v2473_v24  ;;  %v2729_v5 = vadd.f32 %v2728_v0, %v2583_v6 }
 0x271   : > { %v2475_v9 = vpop.f32.mrf.mxu0  ;;  %v2588_v14 = vpop.f32.mrf.mxu1 }
 0x272   : > { %v2589_v29 = vadd.f32 %v2588_v14, %v2475_v9  ;;  %v2709_v28 = vadd.f32 %v2708_v54, %v2587_v3 }
 0x273   : > { %v2477_v22 = vpop.f32.mrf.mxu0  ;;  %v2590_v23 = vpop.f32.mrf.mxu1 }
 0x274   : > { %v2591_v32 = vadd.f32 %v2590_v23, %v2477_v22  ;;  %v2730_v25 = vadd.f32 %v2729_v5, %v2589_v29 }
 0x275   : > { %v2479_v38 = vpop.f32.mrf.mxu0  ;;  %v2592_v41 = vpop.f32.mrf.mxu1 }
 0x276   : > { %v2593_v33 = vadd.f32 %v2592_v41, %v2479_v38  ;;  %v2710_v30 = vadd.f32 %v2709_v28, %v2591_v32 }
 0x277   : > { %v2483_v51 = vpop.f32.mrf.mxu0  ;;  %v2596_v52 = vpop.f32.mrf.mxu1 }
 0x278   : > { %v2597_v59 = vadd.f32 %v2596_v52, %v2483_v51  ;;  %v2731_v12 = vadd.f32 %v2730_v25, %v2593_v33  ;;  %v2779_v52 = vrot.slane %v2772_v47, %v4471_v26 }
 0x279   : > { %v2485_v7 = vpop.f32.mrf.mxu0  ;;  %v2598_v63 = vpop.f32.mrf.mxu1 }
 0x27a   : > { %v2599_v58 = vadd.f32 %v2598_v63, %v2485_v7  ;;  %v2711_v13 = vadd.f32 %v2710_v30, %v2597_v59 }
 0x27b   : > { %v2487_v8 = vpop.f32.mrf.mxu0  ;;  %v2600_v15 = vpop.f32.mrf.mxu1 }
 0x27c   : > { %v2601_v1 = vadd.f32 %v2600_v15, %v2487_v8  ;;  %v2732_v36 = vadd.f32 %v2731_v12, %v2599_v58 }
 0x27d   : > { %v2489_v55 = vpop.f32.mrf.mxu0  ;;  %v2602_v56 = vpop.f32.mrf.mxu1 }
 0x27e   : > { %v2603_v49 = vadd.f32 %v2602_v56, %v2489_v55  ;;  %v2712_v11 = vadd.f32 %v2711_v13, %v2601_v1 }
 0x27f   : > { %v2493_v37 = vpop.f32.mrf.mxu0  ;;  %v2606_v39 = vpop.f32.mrf.mxu1 }
 0x280   : > { %v2607_v50 = vadd.f32 %v2606_v39, %v2493_v37  ;;  %v2733_v17 = vadd.f32 %v2732_v36, %v2603_v49 }
 0x281   : > { %v2495_v10 = vpop.f32.mrf.mxu0  ;;  %v2608_v2 = vpop.f32.mrf.mxu1 }
 0x282   : > { %v2609_v60 = vadd.f32 %v2608_v2, %v2495_v10  ;;  %v2713_v53 = vadd.f32 %v2712_v11, %v2607_v50 }
 0x283   : > { %v2497_v24 = vpop.f32.mrf.mxu0  ;;  %v2610_v16 = vpop.f32.mrf.mxu1 }
 0x284   : > { %v2611_v31 = vadd.f32 %v2610_v16, %v2497_v24  ;;  %v2734_v14 = vadd.f32 %v2733_v17, %v2609_v60 }
 0x285   : > { %v2499_v57 = vpop.f32.mrf.mxu0  ;;  %v2612_v9 = vpop.f32.mrf.mxu1 }
 0x286   : > { %v2714_v18 = vadd.f32 %v2713_v53, %v2611_v31  ;;  %v2613_v19 = vadd.f32 %v2612_v9, %v2499_v57 }
 0x288   : > { %v2715_v20 = vrot.slane %v2714_v18, 4  ;;  %v2735_v21 = vadd.f32 %v2734_v14, %v2613_v19 }
 0x28a   : > { %v2716_v22 = vadd.f32 %v2715_v20, %v2714_v18  ;;  %v2736_v23 = vrot.slane %v2735_v21, 4 }
 0x28c   : > { %v2717_v27 = vrot.slane %v2716_v22, 2  ;;  %v2737_v34 = vadd.f32 %v2736_v23, %v2735_v21 }
 0x28e   : > { %v2718_v35 = vadd.f32 %v2717_v27, %v2716_v22  ;;  %v2738_v4 = vrot.slane %v2737_v34, 2 }
 0x290   : > { %v2719_v38 = vrot.slane %v2718_v35, 1  ;;  %v2739_v41 = vadd.f32 %v2738_v4, %v2737_v34 }
 0x292   : > { %v2740_v42 = vrot.slane %v2739_v41, 1  ;;  %v2720_v45 = vadd.f32 %v2719_v38, %v2718_v35 }
 0x294   : > { %v2741_v46 = vadd.f32 %v2740_v42, %v2739_v41 }
 0x296   : > { %v2750_v48 = vcombine.low %v2720_v45, %v2741_v46 }
 0x298   : > { %v2771_v51 = vrot.slane %v2750_v48, %v4471_v26 }
 0x29a   : > { %v2786_v61 = vrot.slane %v2771_v51, %v4471_v26 }
 0x29c   : > { %v2787_v6 = vcombine.low %v2779_v52, %v2786_v61  ;;  %2798 = sbr.rel (%p3109_p8) target bundleno = 683 (0x2ab), region = 40 }
 0x29e   : > { %v2789_v3 = vadd.f32 %v2787_v6, %v2615_v62 }
 0x2a0   : > { %2794 = vst.msk [vmem:[%s3604_s29] sm:$0x3f] %vm2792_vm1, %v2789_v3 }
 0x2a7   : > { %v2799_v7 = vld [vmem:[%s3604_s29] sm:$0x3f] }
 0x2a8   : > { %v2800_v63 = vmul.f32 0.00390625, %v2799_v7 }
 0x2aa   : > { %2801 = vst.msk [vmem:[%s3604_s29] sm:$0x3f] %vm2792_vm1, %v2800_v63 }
 0x2ab PF: > { %s13_s16 = sadd.s32 1, %s3538_s16   ;;  %s4515_s12 = smov %s3530_s14 }
 0x2ac   : > { %p10_p9 = scmp.ge.s32.totalorder %s13_s16, 6   ;;  %s4516_s13 = smov %s3534_s15 }
 0x2ad   : > { %s4517_s14 = smov %s4520_s17  ;;  %s4518_s15 = smov %s4524_s18 }
 0x2ae   :  { %12 = sbr.rel (!%p10_p9) target bundleno = 3 (0x3), region = 70 }

</bundles_post_ra>
